<compile_context>
chip_gen: v7x
topology: tpu7x:2x2x1
jax: 0.10.0
libtpu: 0.0.40
codegen_flags: <defaults>
</compile_context>

<pallas_src>
import functools

import jax
import jax.numpy as jnp
from jax import lax
from jax.experimental import pallas as pl
from jax.experimental.pallas import tpu as pltpu

_ROW_TILE = 256       # target row tile for [B*S, D] activations
_COL_TILE = 512       # target column tile for wide (vocab) projections
_NEG_INF = -10000.0   # matches reference masked_fill value
_LN_EPS = 1e-12       # matches reference LayerNorm eps


def _round_up(x, m):
    return ((x + m - 1) // m) * m


def _row_grid(m):
    tm = min(_ROW_TILE, _round_up(m, 8))
    return tm, _round_up(m, tm)


def _pad_rows(x, m_pad):
    m = x.shape[0]
    if m == m_pad:
        return x
    return jnp.pad(x, ((0, m_pad - m), (0, 0)))


# ----------------------------- Pallas kernels ------------------------------


def _linear_kernel(x_ref, w_ref, b_ref, o_ref):
    acc = jnp.dot(x_ref[...], w_ref[...], preferred_element_type=jnp.float32)
    o_ref[...] = (acc + b_ref[...]).astype(o_ref.dtype)


def _qkv_kernel(x_ref, wq_ref, bq_ref, wk_ref, bk_ref, wv_ref, bv_ref,
                q_ref, k_ref, v_ref):
    # single pass over x -> three projections (fused QKV)
    x = x_ref[...]
    q = jnp.dot(x, wq_ref[...], preferred_element_type=jnp.float32) + bq_ref[...]
    k = jnp.dot(x, wk_ref[...], preferred_element_type=jnp.float32) + bk_ref[...]
    v = jnp.dot(x, wv_ref[...], preferred_element_type=jnp.float32) + bv_ref[...]
    q_ref[...] = q.astype(q_ref.dtype)
    k_ref[...] = k.astype(k_ref.dtype)
    v_ref[...] = v.astype(v_ref.dtype)


def _kv_kernel(x_ref, wk_ref, bk_ref, wv_ref, bv_ref, k_ref, v_ref):
    x = x_ref[...]
    k = jnp.dot(x, wk_ref[...], preferred_element_type=jnp.float32) + bk_ref[...]
    v = jnp.dot(x, wv_ref[...], preferred_element_type=jnp.float32) + bv_ref[...]
    k_ref[...] = k.astype(k_ref.dtype)
    v_ref[...] = v.astype(v_ref.dtype)


def _attn_kernel(q_ref, k_ref, v_ref, m_ref, o_ref, *, n_head, d_head, scale):
    # One batch per grid step; all heads handled inside via lane slices of the
    # [S, D] blocks -> no split_heads / merge_heads transposes in HBM.
    mask = m_ref[0]  # (Sq, Sk) f32 keep-mask (1 = keep, 0 = mask)
    for h in range(n_head):
        lo = h * d_head
        q = q_ref[:, lo:lo + d_head]   # (Sq, dh) bf16
        k = k_ref[:, lo:lo + d_head]   # (Sk, dh) bf16
        v = v_ref[:, lo:lo + d_head]   # (Sk, dh) bf16
        # contract last dims (q @ k^T) without an explicit transpose
        s = lax.dot_general(q, k, (((1,), (1,)), ((), ())),
                            preferred_element_type=jnp.float32) * scale
        s = jnp.where(mask > 0.0, s, jnp.float32(_NEG_INF))  # masked_fill
        s = s - jnp.max(s, axis=-1, keepdims=True)
        p = jnp.exp(s)
        p = p / jnp.sum(p, axis=-1, keepdims=True)
        o = jnp.dot(p.astype(v.dtype), v, preferred_element_type=jnp.float32)
        o_ref[:, lo:lo + d_head] = o.astype(o_ref.dtype)


def _out_ln_kernel(x_ref, w_ref, b_ref, r_ref, g_ref, bb_ref, o_ref):
    # LayerNorm(x @ W + b + residual)  — attention output proj fused with add&LN
    acc = jnp.dot(x_ref[...], w_ref[...], preferred_element_type=jnp.float32)
    y = acc + b_ref[...] + r_ref[...].astype(jnp.float32)
    mean = jnp.mean(y, axis=-1, keepdims=True)
    var = jnp.mean((y - mean) ** 2, axis=-1, keepdims=True)
    yn = (y - mean) * lax.rsqrt(var + _LN_EPS)
    o_ref[...] = (yn * g_ref[...] + bb_ref[...]).astype(o_ref.dtype)


def _ffn_ln_kernel(x_ref, w1_ref, b1_ref, w2_ref, b2_ref, g_ref, bb_ref, o_ref):
    # LayerNorm(relu(x @ W1 + b1) @ W2 + b2 + x)  — whole FFN sublayer fused
    x = x_ref[...]
    h = jnp.dot(x, w1_ref[...], preferred_element_type=jnp.float32) + b1_ref[...]
    h = jnp.maximum(h, 0.0)
    y = jnp.dot(h.astype(w2_ref.dtype), w2_ref[...],
                preferred_element_type=jnp.float32) + b2_ref[...]
    y = y + x.astype(jnp.float32)
    mean = jnp.mean(y, axis=-1, keepdims=True)
    var = jnp.mean((y - mean) ** 2, axis=-1, keepdims=True)
    yn = (y - mean) * lax.rsqrt(var + _LN_EPS)
    o_ref[...] = (yn * g_ref[...] + bb_ref[...]).astype(o_ref.dtype)


# ----------------------------- kernel wrappers ------------------------------

_P1 = pltpu.CompilerParams(dimension_semantics=("parallel",))
_P2 = pltpu.CompilerParams(dimension_semantics=("parallel", "parallel"))


def linear(x, w, b, out_dtype=jnp.bfloat16):
    """General [M,K]@[K,N]+b with row and column tiling (vocab-safe)."""
    M, K = x.shape
    N = w.shape[1]
    tm, m_pad = _row_grid(M)
    if N <= _COL_TILE:
        tn, n_pad = N, N
    else:
        tn = _COL_TILE
        n_pad = _round_up(N, tn)
    xp = _pad_rows(x, m_pad)
    wp = w if n_pad == N else jnp.pad(w, ((0, 0), (0, n_pad - N)))
    bp = b if n_pad == N else jnp.pad(b, ((0, n_pad - N),))
    out = pl.pallas_call(
        _linear_kernel,
        out_shape=jax.ShapeDtypeStruct((m_pad, n_pad), out_dtype),
        grid=(m_pad // tm, n_pad // tn),
        in_specs=[
            pl.BlockSpec((tm, K), lambda i, j: (i, 0)),
            pl.BlockSpec((K, tn), lambda i, j: (0, j)),
            pl.BlockSpec((1, tn), lambda i, j: (0, j)),
        ],
        out_specs=pl.BlockSpec((tm, tn), lambda i, j: (i, j)),
        compiler_params=_P2,
    )(xp, wp, bp.reshape(1, -1))
    return out[:M, :N]


def qkv_proj(x, p):
    M, D = x.shape
    tm, m_pad = _row_grid(M)
    xp = _pad_rows(x, m_pad)
    wspec = pl.BlockSpec((D, D), lambda i: (0, 0))
    bspec = pl.BlockSpec((1, D), lambda i: (0, 0))
    q, k, v = pl.pallas_call(
        _qkv_kernel,
        out_shape=tuple(jax.ShapeDtypeStruct((m_pad, D), jnp.bfloat16)
                        for _ in range(3)),
        grid=(m_pad // tm,),
        in_specs=[pl.BlockSpec((tm, D), lambda i: (i, 0)),
                  wspec, bspec, wspec, bspec, wspec, bspec],
        out_specs=[pl.BlockSpec((tm, D), lambda i: (i, 0)) for _ in range(3)],
        compiler_params=_P1,
    )(xp,
      p["wq"]["w"], p["wq"]["b"].reshape(1, D),
      p["wk"]["w"], p["wk"]["b"].reshape(1, D),
      p["wv"]["w"], p["wv"]["b"].reshape(1, D))
    return q[:M], k[:M], v[:M]


def kv_proj(x, p):
    M, D = x.shape
    tm, m_pad = _row_grid(M)
    xp = _pad_rows(x, m_pad)
    wspec = pl.BlockSpec((D, D), lambda i: (0, 0))
    bspec = pl.BlockSpec((1, D), lambda i: (0, 0))
    k, v = pl.pallas_call(
        _kv_kernel,
        out_shape=tuple(jax.ShapeDtypeStruct((m_pad, D), jnp.bfloat16)
                        for _ in range(2)),
        grid=(m_pad // tm,),
        in_specs=[pl.BlockSpec((tm, D), lambda i: (i, 0)),
                  wspec, bspec, wspec, bspec],
        out_specs=[pl.BlockSpec((tm, D), lambda i: (i, 0)) for _ in range(2)],
        compiler_params=_P1,
    )(xp,
      p["wk"]["w"], p["wk"]["b"].reshape(1, D),
      p["wv"]["w"], p["wv"]["b"].reshape(1, D))
    return k[:M], v[:M]


def attention(q, k, v, mask, n_head):
    # q: [B*Sq, D] bf16, k/v: [B*Sk, D] bf16, mask: [B, Sq, Sk] f32 keep-mask
    B, Sq, Sk = mask.shape
    D = q.shape[1]
    dh = D // n_head
    kernel = functools.partial(_attn_kernel, n_head=n_head, d_head=dh,
                               scale=1.0 / float(dh) ** 0.5)
    return pl.pallas_call(
        kernel,
        out_shape=jax.ShapeDtypeStruct((B * Sq, D), jnp.bfloat16),
        grid=(B,),
        in_specs=[
            pl.BlockSpec((Sq, D), lambda b: (b, 0)),
            pl.BlockSpec((Sk, D), lambda b: (b, 0)),
            pl.BlockSpec((Sk, D), lambda b: (b, 0)),
            pl.BlockSpec((1, Sq, Sk), lambda b: (b, 0, 0)),
        ],
        out_specs=pl.BlockSpec((Sq, D), lambda b: (b, 0)),
        compiler_params=_P1,
    )(q, k, v, mask)


def out_proj_add_ln(x, w, b, residual, gamma, beta):
    M, D = x.shape
    tm, m_pad = _row_grid(M)
    xp = _pad_rows(x, m_pad)
    rp = _pad_rows(residual, m_pad)
    out = pl.pallas_call(
        _out_ln_kernel,
        out_shape=jax.ShapeDtypeStruct((m_pad, D), jnp.bfloat16),
        grid=(m_pad // tm,),
        in_specs=[
            pl.BlockSpec((tm, D), lambda i: (i, 0)),
            pl.BlockSpec((D, D), lambda i: (0, 0)),
            pl.BlockSpec((1, D), lambda i: (0, 0)),
            pl.BlockSpec((tm, D), lambda i: (i, 0)),
            pl.BlockSpec((1, D), lambda i: (0, 0)),
            pl.BlockSpec((1, D), lambda i: (0, 0)),
        ],
        out_specs=pl.BlockSpec((tm, D), lambda i: (i, 0)),
        compiler_params=_P1,
    )(xp, w, b.reshape(1, D), rp, gamma.reshape(1, D), beta.reshape(1, D))
    return out[:M]


def ffn_add_ln(x, w1, b1, w2, b2, gamma, beta):
    # TODO(synk): for production-size D/F on v7x (64 MiB VMEM), tile F with a
    # K-reduction grid axis instead of keeping both FFN weights fully resident.
    M, D = x.shape
    F = w1.shape[1]
    tm, m_pad = _row_grid(M)
    xp = _pad_rows(x, m_pad)
    out = pl.pallas_call(
        _ffn_ln_kernel,
        out_shape=jax.ShapeDtypeStruct((m_pad, D), jnp.bfloat16),
        grid=(m_pad // tm,),
        in_specs=[
            pl.BlockSpec((tm, D), lambda i: (i, 0)),
            pl.BlockSpec((D, F), lambda i: (0, 0)),
            pl.BlockSpec((1, F), lambda i: (0, 0)),
            pl.BlockSpec((F, D), lambda i: (0, 0)),
            pl.BlockSpec((1, D), lambda i: (0, 0)),
            pl.BlockSpec((1, D), lambda i: (0, 0)),
            pl.BlockSpec((1, D), lambda i: (0, 0)),
        ],
        out_specs=pl.BlockSpec((tm, D), lambda i: (i, 0)),
        compiler_params=_P1,
    )(xp, w1, b1.reshape(1, F), w2, b2.reshape(1, D),
      gamma.reshape(1, D), beta.reshape(1, D))
    return out[:M]


# ----------------------------- model (glue) ---------------------------------


def encoder_layer(p, x, src_mask, n_head):
    q, k, v = qkv_proj(x, p["attn"])
    a = attention(q, k, v, src_mask, n_head)
    x = out_proj_add_ln(a, p["attn"]["wo"]["w"], p["attn"]["wo"]["b"], x,
                        p["ln1"]["g"], p["ln1"]["b"])
    x = ffn_add_ln(x, p["ffn1"]["w"], p["ffn1"]["b"],
                   p["ffn2"]["w"], p["ffn2"]["b"],
                   p["ln2"]["g"], p["ln2"]["b"])
    return x


def decoder_layer(p, x, enc, trg_mask, src_mask, n_head):
    # masked self-attention
    q, k, v = qkv_proj(x, p["self_attn"])
    a = attention(q, k, v, trg_mask, n_head)
    x = out_proj_add_ln(a, p["self_attn"]["wo"]["w"], p["self_attn"]["wo"]["b"],
                        x, p["ln1"]["g"], p["ln1"]["b"])
    # cross-attention
    q = linear(x, p["cross_attn"]["wq"]["w"], p["cross_attn"]["wq"]["b"])
    k, v = kv_proj(enc, p["cross_attn"])
    a = attention(q, k, v, src_mask, n_head)
    x = out_proj_add_ln(a, p["cross_attn"]["wo"]["w"], p["cross_attn"]["wo"]["b"],
                        x, p["ln2"]["g"], p["ln2"]["b"])
    # FFN
    x = ffn_add_ln(x, p["ffn1"]["w"], p["ffn1"]["b"],
                   p["ffn2"]["w"], p["ffn2"]["b"],
                   p["ln3"]["g"], p["ln3"]["b"])
    return x


def sinusoidal_encoding(max_len, d_model):
    pos = jnp.arange(max_len, dtype=jnp.float32)[:, None]
    two_i = jnp.arange(0, d_model, 2, dtype=jnp.float32)[None, :]
    angles = pos / jnp.power(10000.0, two_i / d_model)
    pe = jnp.zeros((max_len, d_model), jnp.float32)
    pe = pe.at[:, 0::2].set(jnp.sin(angles))
    pe = pe.at[:, 1::2].set(jnp.cos(angles))
    return pe


def embed(tok_table, pos_enc, tokens):
    # TODO(synk): embedding gather stays in plain JAX (data-dependent row gather).
    B, S = tokens.shape
    x = jnp.take(tok_table, tokens, axis=0) + pos_enc[:S][None, :, :]
    return x.reshape(B * S, -1).astype(jnp.bfloat16)  # dropout = identity (eval)


def make_pad_mask(q_ids, k_ids, pad_q, pad_k):
    qm = (q_ids != pad_q)[:, :, None]
    km = (k_ids != pad_k)[:, None, :]
    return (qm & km).astype(jnp.float32)  # [B, Sq, Sk]


def make_causal_mask(len_q, len_k):
    return jnp.tril(jnp.ones((len_q, len_k), jnp.float32))


def transformer_forward(params, src, trg, src_pad_idx, trg_pad_idx, n_head):
    # NOTE: as in the reference repo, the cross-attention reuses src_mask of
    # shape [B, S_src, S_src]; this requires S_trg == S_src (true here).
    B, S_src = src.shape
    _, S_trg = trg.shape

    src_mask = make_pad_mask(src, src, src_pad_idx, src_pad_idx)
    trg_mask = make_pad_mask(trg, trg, trg_pad_idx, trg_pad_idx) * make_causal_mask(
        S_trg, S_trg)[None, :, :]

    # encoder
    x = embed(params["enc_emb"], params["pos_enc"], src)
    for lp in params["enc_layers"]:
        x = encoder_layer(lp, x, src_mask, n_head)
    enc = x

    # decoder
    y = embed(params["dec_emb"], params["pos_enc"], trg)
    for lp in params["dec_layers"]:
        y = decoder_layer(lp, y, enc, trg_mask, src_mask, n_head)

    logits = linear(y, params["out_proj"]["w"], params["out_proj"]["b"],
                    out_dtype=jnp.float32)
    return logits.reshape(B, S_trg, -1)


# ----------------------------- parameter init -------------------------------


def _init_linear(key, din, dout):
    kw, kb = jax.random.split(key)
    return {
        "w": (0.02 * jax.random.normal(kw, (din, dout), jnp.float32)
              ).astype(jnp.bfloat16),
        "b": 0.02 * jax.random.normal(kb, (dout,), jnp.float32),
    }


def _init_ln(d):
    return {"g": jnp.ones((d,), jnp.float32), "b": jnp.zeros((d,), jnp.float32)}


def _init_mha(key, d):
    ks = jax.random.split(key, 4)
    return {name: _init_linear(k, d, d)
            for name, k in zip(("wq", "wk", "wv", "wo"), ks)}


def init_params(key, enc_voc, dec_voc, max_len, d_model, ffn_hidden, n_layer):
    keys = iter(jax.random.split(key, 4 + 8 * n_layer))
    params = {
        "enc_emb": 0.02 * jax.random.normal(next(keys), (enc_voc, d_model), jnp.float32),
        "dec_emb": 0.02 * jax.random.normal(next(keys), (dec_voc, d_model), jnp.float32),
        "pos_enc": sinusoidal_encoding(max_len, d_model),
        "out_proj": _init_linear(next(keys), d_model, dec_voc),
        "enc_layers": [],
        "dec_layers": [],
    }
    for _ in range(n_layer):
        params["enc_layers"].append(
            {
                "attn": _init_mha(next(keys), d_model),
                "ln1": _init_ln(d_model),
                "ffn1": _init_linear(next(keys), d_model, ffn_hidden),
                "ffn2": _init_linear(next(keys), ffn_hidden, d_model),
                "ln2": _init_ln(d_model),
            }
        )
    for _ in range(n_layer):
        params["dec_layers"].append(
            {
                "self_attn": _init_mha(next(keys), d_model),
                "ln1": _init_ln(d_model),
                "cross_attn": _init_mha(next(keys), d_model),
                "ln2": _init_ln(d_model),
                "ffn1": _init_linear(next(keys), d_model, ffn_hidden),
                "ffn2": _init_linear(next(keys), ffn_hidden, d_model),
                "ln3": _init_ln(d_model),
            }
        )
    return params


# --------------------------------- main --------------------------------------

if __name__ == "__main__":
    # small config consistent with the module's constructor
    B = 2
    SEQ = 8           # src and trg length (equal, as required by the reference)
    D_MODEL = 32
    N_HEAD = 4
    N_LAYER = 2
    FFN_HIDDEN = 64
    ENC_VOC = 32
    DEC_VOC = 32
    MAX_LEN = 16
    SRC_PAD_IDX = 0
    TRG_PAD_IDX = 0

    key = jax.random.PRNGKey(0)
    kp, ks, kt = jax.random.split(key, 3)

    params = init_params(kp, ENC_VOC, DEC_VOC, MAX_LEN, D_MODEL, FFN_HIDDEN, N_LAYER)
    src = jax.random.randint(ks, (B, SEQ), 0, ENC_VOC, dtype=jnp.int32)
    trg = jax.random.randint(kt, (B, SEQ), 0, DEC_VOC, dtype=jnp.int32)

    fwd = jax.jit(
        lambda p, s, t: transformer_forward(p, s, t, SRC_PAD_IDX, TRG_PAD_IDX, N_HEAD)
    )
    out = fwd(params, src, trg)
    out = jax.block_until_ready(out)

    assert out.shape == (B, SEQ, DEC_VOC), out.shape
    assert bool(jnp.all(jnp.isfinite(out)))
    print("KERNEL_OK")
</pallas_src>

<mosaic_0001>
module attributes {stable_mosaic.version = 11 : i64} {
  func.func @_qkv_kernel(%arg0: i32, %arg1: memref<16x32xbf16, #tpu.memory_space<vmem>>, %arg2: memref<32x32xbf16, #tpu.memory_space<vmem>>, %arg3: memref<1x32xf32, #tpu.memory_space<vmem>>, %arg4: memref<32x32xbf16, #tpu.memory_space<vmem>>, %arg5: memref<1x32xf32, #tpu.memory_space<vmem>>, %arg6: memref<32x32xbf16, #tpu.memory_space<vmem>>, %arg7: memref<1x32xf32, #tpu.memory_space<vmem>>, %arg8: memref<16x32xbf16, #tpu.memory_space<vmem>>, %arg9: memref<16x32xbf16, #tpu.memory_space<vmem>>, %arg10: memref<16x32xbf16, #tpu.memory_space<vmem>>) attributes {dimension_semantics = [#tpu.dimension_semantics<parallel>], iteration_bounds = array<i64: 1>, scalar_prefetch = 0 : i64, scratch_operands = 0 : i64, tpu.core_type = #tpu.core_type<tc>, window_params = [{transform_indices = @transform_0, window_bounds = array<i64: 16, 32>}, {pipeline_mode = #tpu.pipeline_mode<synchronous>, transform_indices = @transform_1, window_bounds = array<i64: 32, 32>}, {pipeline_mode = #tpu.pipeline_mode<synchronous>, transform_indices = @transform_2, window_bounds = array<i64: 1, 32>}, {pipeline_mode = #tpu.pipeline_mode<synchronous>, transform_indices = @transform_3, window_bounds = array<i64: 32, 32>}, {pipeline_mode = #tpu.pipeline_mode<synchronous>, transform_indices = @transform_4, window_bounds = array<i64: 1, 32>}, {pipeline_mode = #tpu.pipeline_mode<synchronous>, transform_indices = @transform_5, window_bounds = array<i64: 32, 32>}, {pipeline_mode = #tpu.pipeline_mode<synchronous>, transform_indices = @transform_6, window_bounds = array<i64: 1, 32>}, {transform_indices = @transform_7, window_bounds = array<i64: 16, 32>}, {transform_indices = @transform_8, window_bounds = array<i64: 16, 32>}, {transform_indices = @transform_9, window_bounds = array<i64: 16, 32>}]} {
    %c0 = arith.constant 0 : index
    %c0_0 = arith.constant 0 : index
    %0 = vector.load %arg1[%c0, %c0_0] : memref<16x32xbf16, #tpu.memory_space<vmem>>, vector<16x32xbf16>
    %c0_1 = arith.constant 0 : index
    %c0_2 = arith.constant 0 : index
    %1 = vector.load %arg2[%c0_1, %c0_2] : memref<32x32xbf16, #tpu.memory_space<vmem>>, vector<32x32xbf16>
    %cst = arith.constant dense<0.000000e+00> : vector<16x32xf32>
    %2 = tpu.matmul %0, %1, %cst {dimension_numbers = #tpu.dot_dimension_numbers<[1], [0], [0], [1], [0, 0, 1, 1], [], []>} : vector<16x32xbf16>, vector<32x32xbf16>, vector<16x32xf32> -> vector<16x32xf32>
    %c0_3 = arith.constant 0 : index
    %c0_4 = arith.constant 0 : index
    %3 = vector.load %arg3[%c0_3, %c0_4] : memref<1x32xf32, #tpu.memory_space<vmem>>, vector<1x32xf32>
    %4 = vector.broadcast %3 : vector<1x32xf32> to vector<16x32xf32>
    %5 = arith.addf %2, %4 : vector<16x32xf32>
    %c0_5 = arith.constant 0 : index
    %c0_6 = arith.constant 0 : index
    %6 = vector.load %arg4[%c0_5, %c0_6] : memref<32x32xbf16, #tpu.memory_space<vmem>>, vector<32x32xbf16>
    %cst_7 = arith.constant dense<0.000000e+00> : vector<16x32xf32>
    %7 = tpu.matmul %0, %6, %cst_7 {dimension_numbers = #tpu.dot_dimension_numbers<[1], [0], [0], [1], [0, 0, 1, 1], [], []>} : vector<16x32xbf16>, vector<32x32xbf16>, vector<16x32xf32> -> vector<16x32xf32>
    %c0_8 = arith.constant 0 : index
    %c0_9 = arith.constant 0 : index
    %8 = vector.load %arg5[%c0_8, %c0_9] : memref<1x32xf32, #tpu.memory_space<vmem>>, vector<1x32xf32>
    %9 = vector.broadcast %8 : vector<1x32xf32> to vector<16x32xf32>
    %10 = arith.addf %7, %9 : vector<16x32xf32>
    %c0_10 = arith.constant 0 : index
    %c0_11 = arith.constant 0 : index
    %11 = vector.load %arg6[%c0_10, %c0_11] : memref<32x32xbf16, #tpu.memory_space<vmem>>, vector<32x32xbf16>
    %cst_12 = arith.constant dense<0.000000e+00> : vector<16x32xf32>
    %12 = tpu.matmul %0, %11, %cst_12 {dimension_numbers = #tpu.dot_dimension_numbers<[1], [0], [0], [1], [0, 0, 1, 1], [], []>} : vector<16x32xbf16>, vector<32x32xbf16>, vector<16x32xf32> -> vector<16x32xf32>
    %c0_13 = arith.constant 0 : index
    %c0_14 = arith.constant 0 : index
    %13 = vector.load %arg7[%c0_13, %c0_14] : memref<1x32xf32, #tpu.memory_space<vmem>>, vector<1x32xf32>
    %14 = vector.broadcast %13 : vector<1x32xf32> to vector<16x32xf32>
    %15 = arith.addf %12, %14 : vector<16x32xf32>
    %16 = arith.truncf %5 : vector<16x32xf32> to vector<16x32xbf16>
    %c0_15 = arith.constant 0 : index
    %c0_16 = arith.constant 0 : index
    %17 = vector.load %arg8[%c0_15, %c0_16] : memref<16x32xbf16, #tpu.memory_space<vmem>>, vector<16x32xbf16>
    tpu.vector_store %arg8[%c0_15, %c0_16], %16 {strides = array<i32>} : memref<16x32xbf16, #tpu.memory_space<vmem>>, vector<16x32xbf16>,
    %18 = arith.truncf %10 : vector<16x32xf32> to vector<16x32xbf16>
    %c0_17 = arith.constant 0 : index
    %c0_18 = arith.constant 0 : index
    %19 = vector.load %arg9[%c0_17, %c0_18] : memref<16x32xbf16, #tpu.memory_space<vmem>>, vector<16x32xbf16>
    tpu.vector_store %arg9[%c0_17, %c0_18], %18 {strides = array<i32>} : memref<16x32xbf16, #tpu.memory_space<vmem>>, vector<16x32xbf16>,
    %20 = arith.truncf %15 : vector<16x32xf32> to vector<16x32xbf16>
    %c0_19 = arith.constant 0 : index
    %c0_20 = arith.constant 0 : index
    %21 = vector.load %arg10[%c0_19, %c0_20] : memref<16x32xbf16, #tpu.memory_space<vmem>>, vector<16x32xbf16>
    tpu.vector_store %arg10[%c0_19, %c0_20], %20 {strides = array<i32>} : memref<16x32xbf16, #tpu.memory_space<vmem>>, vector<16x32xbf16>,
    return
  }
  func.func @transform_0(%arg0: i32) -> (i32, i32) {
    %c0_i32 = arith.constant 0 : i32
    %c0_i32_0 = arith.constant 0 : i32
    return %arg0, %c0_i32 : i32, i32
  }
  func.func @transform_1(%arg0: i32) -> (i32, i32) {
    %c0_i32 = arith.constant 0 : i32
    %c0_i32_0 = arith.constant 0 : i32
    %c0_i32_1 = arith.constant 0 : i32
    return %c0_i32, %c0_i32_0 : i32, i32
  }
  func.func @transform_2(%arg0: i32) -> (i32, i32) {
    %c0_i32 = arith.constant 0 : i32
    %c0_i32_0 = arith.constant 0 : i32
    %c0_i32_1 = arith.constant 0 : i32
    return %c0_i32, %c0_i32_0 : i32, i32
  }
  func.func @transform_3(%arg0: i32) -> (i32, i32) {
    %c0_i32 = arith.constant 0 : i32
    %c0_i32_0 = arith.constant 0 : i32
    %c0_i32_1 = arith.constant 0 : i32
    return %c0_i32, %c0_i32_0 : i32, i32
  }
  func.func @transform_4(%arg0: i32) -> (i32, i32) {
    %c0_i32 = arith.constant 0 : i32
    %c0_i32_0 = arith.constant 0 : i32
    %c0_i32_1 = arith.constant 0 : i32
    return %c0_i32, %c0_i32_0 : i32, i32
  }
  func.func @transform_5(%arg0: i32) -> (i32, i32) {
    %c0_i32 = arith.constant 0 : i32
    %c0_i32_0 = arith.constant 0 : i32
    %c0_i32_1 = arith.constant 0 : i32
    return %c0_i32, %c0_i32_0 : i32, i32
  }
  func.func @transform_6(%arg0: i32) -> (i32, i32) {
    %c0_i32 = arith.constant 0 : i32
    %c0_i32_0 = arith.constant 0 : i32
    %c0_i32_1 = arith.constant 0 : i32
    return %c0_i32, %c0_i32_0 : i32, i32
  }
  func.func @transform_7(%arg0: i32) -> (i32, i32) {
    %c0_i32 = arith.constant 0 : i32
    %c0_i32_0 = arith.constant 0 : i32
    return %arg0, %c0_i32 : i32, i32
  }
  func.func @transform_8(%arg0: i32) -> (i32, i32) {
    %c0_i32 = arith.constant 0 : i32
    %c0_i32_0 = arith.constant 0 : i32
    return %arg0, %c0_i32 : i32, i32
  }
  func.func @transform_9(%arg0: i32) -> (i32, i32) {
    %c0_i32 = arith.constant 0 : i32
    %c0_i32_0 = arith.constant 0 : i32
    return %arg0, %c0_i32 : i32, i32
  }
}

module attributes {stable_mosaic.version = 11 : i64} {
  func.func @_out_ln_kernel(%arg0: i32, %arg1: memref<16x32xbf16, #tpu.memory_space<vmem>>, %arg2: memref<32x32xbf16, #tpu.memory_space<vmem>>, %arg3: memref<1x32xf32, #tpu.memory_space<vmem>>, %arg4: memref<16x32xbf16, #tpu.memory_space<vmem>>, %arg5: memref<1x32xf32, #tpu.memory_space<vmem>>, %arg6: memref<1x32xf32, #tpu.memory_space<vmem>>, %arg7: memref<16x32xbf16, #tpu.memory_space<vmem>>) attributes {dimension_semantics = [#tpu.dimension_semantics<parallel>], iteration_bounds = array<i64: 1>, scalar_prefetch = 0 : i64, scratch_operands = 0 : i64, tpu.core_type = #tpu.core_type<tc>, window_params = [{transform_indices = @transform_0, window_bounds = array<i64: 16, 32>}, {pipeline_mode = #tpu.pipeline_mode<synchronous>, transform_indices = @transform_1, window_bounds = array<i64: 32, 32>}, {pipeline_mode = #tpu.pipeline_mode<synchronous>, transform_indices = @transform_2, window_bounds = array<i64: 1, 32>}, {transform_indices = @transform_3, window_bounds = array<i64: 16, 32>}, {pipeline_mode = #tpu.pipeline_mode<synchronous>, transform_indices = @transform_4, window_bounds = array<i64: 1, 32>}, {pipeline_mode = #tpu.pipeline_mode<synchronous>, transform_indices = @transform_5, window_bounds = array<i64: 1, 32>}, {transform_indices = @transform_6, window_bounds = array<i64: 16, 32>}]} {
    %c0 = arith.constant 0 : index
    %c0_0 = arith.constant 0 : index
    %0 = vector.load %arg1[%c0, %c0_0] : memref<16x32xbf16, #tpu.memory_space<vmem>>, vector<16x32xbf16>
    %c0_1 = arith.constant 0 : index
    %c0_2 = arith.constant 0 : index
    %1 = vector.load %arg2[%c0_1, %c0_2] : memref<32x32xbf16, #tpu.memory_space<vmem>>, vector<32x32xbf16>
    %cst = arith.constant dense<0.000000e+00> : vector<16x32xf32>
    %2 = tpu.matmul %0, %1, %cst {dimension_numbers = #tpu.dot_dimension_numbers<[1], [0], [0], [1], [0, 0, 1, 1], [], []>} : vector<16x32xbf16>, vector<32x32xbf16>, vector<16x32xf32> -> vector<16x32xf32>
    %c0_3 = arith.constant 0 : index
    %c0_4 = arith.constant 0 : index
    %3 = vector.load %arg3[%c0_3, %c0_4] : memref<1x32xf32, #tpu.memory_space<vmem>>, vector<1x32xf32>
    %4 = vector.broadcast %3 : vector<1x32xf32> to vector<16x32xf32>
    %5 = arith.addf %2, %4 : vector<16x32xf32>
    %c0_5 = arith.constant 0 : index
    %c0_6 = arith.constant 0 : index
    %6 = vector.load %arg4[%c0_5, %c0_6] : memref<16x32xbf16, #tpu.memory_space<vmem>>, vector<16x32xbf16>
    %7 = arith.extf %6 : vector<16x32xbf16> to vector<16x32xf32>
    %8 = arith.addf %5, %7 : vector<16x32xf32>
    %cst_7 = arith.constant dense<0.000000e+00> : vector<16xf32>
    %9 = vector.multi_reduction <add>, %8, %cst_7 [1] : vector<16x32xf32> to vector<16xf32>
    %10 = vector.shape_cast %9 : vector<16xf32> to vector<16x1xf32>
    %cst_8 = arith.constant 3.200000e+01 : f32
    %11 = vector.broadcast %cst_8 : f32 to vector<16x1xf32>
    %12 = arith.divf %10, %11 : vector<16x1xf32>
    %13 = vector.broadcast %12 : vector<16x1xf32> to vector<16x32xf32>
    %14 = arith.subf %8, %13 : vector<16x32xf32>
    %15 = arith.mulf %14, %14 : vector<16x32xf32>
    %cst_9 = arith.constant dense<0.000000e+00> : vector<16xf32>
    %16 = vector.multi_reduction <add>, %15, %cst_9 [1] : vector<16x32xf32> to vector<16xf32>
    %17 = vector.shape_cast %16 : vector<16xf32> to vector<16x1xf32>
    %cst_10 = arith.constant 3.200000e+01 : f32
    %18 = vector.broadcast %cst_10 : f32 to vector<16x1xf32>
    %19 = arith.divf %17, %18 : vector<16x1xf32>
    %20 = vector.broadcast %12 : vector<16x1xf32> to vector<16x32xf32>
    %21 = arith.subf %8, %20 : vector<16x32xf32>
    %cst_11 = arith.constant 9.99999996E-13 : f32
    %22 = vector.broadcast %cst_11 : f32 to vector<16x1xf32>
    %23 = arith.addf %19, %22 : vector<16x1xf32>
    %24 = math.rsqrt %23 : vector<16x1xf32>
    %25 = vector.broadcast %24 : vector<16x1xf32> to vector<16x32xf32>
    %26 = arith.mulf %21, %25 : vector<16x32xf32>
    %c0_12 = arith.constant 0 : index
    %c0_13 = arith.constant 0 : index
    %27 = vector.load %arg5[%c0_12, %c0_13] : memref<1x32xf32, #tpu.memory_space<vmem>>, vector<1x32xf32>
    %28 = vector.broadcast %27 : vector<1x32xf32> to vector<16x32xf32>
    %29 = arith.mulf %26, %28 : vector<16x32xf32>
    %c0_14 = arith.constant 0 : index
    %c0_15 = arith.constant 0 : index
    %30 = vector.load %arg6[%c0_14, %c0_15] : memref<1x32xf32, #tpu.memory_space<vmem>>, vector<1x32xf32>
    %31 = vector.broadcast %30 : vector<1x32xf32> to vector<16x32xf32>
    %32 = arith.addf %29, %31 : vector<16x32xf32>
    %33 = arith.truncf %32 : vector<16x32xf32> to vector<16x32xbf16>
    %c0_16 = arith.constant 0 : index
    %c0_17 = arith.constant 0 : index
    %34 = vector.load %arg7[%c0_16, %c0_17] : memref<16x32xbf16, #tpu.memory_space<vmem>>, vector<16x32xbf16>
    tpu.vector_store %arg7[%c0_16, %c0_17], %33 {strides = array<i32>} : memref<16x32xbf16, #tpu.memory_space<vmem>>, vector<16x32xbf16>,
    return
  }
  func.func @transform_0(%arg0: i32) -> (i32, i32) {
    %c0_i32 = arith.constant 0 : i32
    %c0_i32_0 = arith.constant 0 : i32
    return %arg0, %c0_i32 : i32, i32
  }
  func.func @transform_1(%arg0: i32) -> (i32, i32) {
    %c0_i32 = arith.constant 0 : i32
    %c0_i32_0 = arith.constant 0 : i32
    %c0_i32_1 = arith.constant 0 : i32
    return %c0_i32, %c0_i32_0 : i32, i32
  }
  func.func @transform_2(%arg0: i32) -> (i32, i32) {
    %c0_i32 = arith.constant 0 : i32
    %c0_i32_0 = arith.constant 0 : i32
    %c0_i32_1 = arith.constant 0 : i32
    return %c0_i32, %c0_i32_0 : i32, i32
  }
  func.func @transform_3(%arg0: i32) -> (i32, i32) {
    %c0_i32 = arith.constant 0 : i32
    %c0_i32_0 = arith.constant 0 : i32
    return %arg0, %c0_i32 : i32, i32
  }
  func.func @transform_4(%arg0: i32) -> (i32, i32) {
    %c0_i32 = arith.constant 0 : i32
    %c0_i32_0 = arith.constant 0 : i32
    %c0_i32_1 = arith.constant 0 : i32
    return %c0_i32, %c0_i32_0 : i32, i32
  }
  func.func @transform_5(%arg0: i32) -> (i32, i32) {
    %c0_i32 = arith.constant 0 : i32
    %c0_i32_0 = arith.constant 0 : i32
    %c0_i32_1 = arith.constant 0 : i32
    return %c0_i32, %c0_i32_0 : i32, i32
  }
  func.func @transform_6(%arg0: i32) -> (i32, i32) {
    %c0_i32 = arith.constant 0 : i32
    %c0_i32_0 = arith.constant 0 : i32
    return %arg0, %c0_i32 : i32, i32
  }
}

module attributes {stable_mosaic.version = 11 : i64} {
  func.func @_linear_kernel(%arg0: i32, %arg1: i32, %arg2: memref<16x32xbf16, #tpu.memory_space<vmem>>, %arg3: memref<32x32xbf16, #tpu.memory_space<vmem>>, %arg4: memref<1x32xf32, #tpu.memory_space<vmem>>, %arg5: memref<16x32xbf16, #tpu.memory_space<vmem>>) attributes {dimension_semantics = [#tpu.dimension_semantics<parallel>, #tpu.dimension_semantics<parallel>], iteration_bounds = array<i64: 1, 1>, scalar_prefetch = 0 : i64, scratch_operands = 0 : i64, tpu.core_type = #tpu.core_type<tc>, window_params = [{transform_indices = @transform_0, window_bounds = array<i64: 16, 32>}, {transform_indices = @transform_1, window_bounds = array<i64: 32, 32>}, {transform_indices = @transform_2, window_bounds = array<i64: 1, 32>}, {transform_indices = @transform_3, window_bounds = array<i64: 16, 32>}]} {
    %c0 = arith.constant 0 : index
    %c0_0 = arith.constant 0 : index
    %0 = vector.load %arg2[%c0, %c0_0] : memref<16x32xbf16, #tpu.memory_space<vmem>>, vector<16x32xbf16>
    %c0_1 = arith.constant 0 : index
    %c0_2 = arith.constant 0 : index
    %1 = vector.load %arg3[%c0_1, %c0_2] : memref<32x32xbf16, #tpu.memory_space<vmem>>, vector<32x32xbf16>
    %cst = arith.constant dense<0.000000e+00> : vector<16x32xf32>
    %2 = tpu.matmul %0, %1, %cst {dimension_numbers = #tpu.dot_dimension_numbers<[1], [0], [0], [1], [0, 0, 1, 1], [], []>} : vector<16x32xbf16>, vector<32x32xbf16>, vector<16x32xf32> -> vector<16x32xf32>
    %c0_3 = arith.constant 0 : index
    %c0_4 = arith.constant 0 : index
    %3 = vector.load %arg4[%c0_3, %c0_4] : memref<1x32xf32, #tpu.memory_space<vmem>>, vector<1x32xf32>
    %4 = vector.broadcast %3 : vector<1x32xf32> to vector<16x32xf32>
    %5 = arith.addf %2, %4 : vector<16x32xf32>
    %6 = arith.truncf %5 : vector<16x32xf32> to vector<16x32xbf16>
    %c0_5 = arith.constant 0 : index
    %c0_6 = arith.constant 0 : index
    %7 = vector.load %arg5[%c0_5, %c0_6] : memref<16x32xbf16, #tpu.memory_space<vmem>>, vector<16x32xbf16>
    tpu.vector_store %arg5[%c0_5, %c0_6], %6 {strides = array<i32>} : memref<16x32xbf16, #tpu.memory_space<vmem>>, vector<16x32xbf16>,
    return
  }
  func.func @transform_0(%arg0: i32, %arg1: i32) -> (i32, i32) {
    %c0_i32 = arith.constant 0 : i32
    %c0_i32_0 = arith.constant 0 : i32
    return %arg0, %c0_i32 : i32, i32
  }
  func.func @transform_1(%arg0: i32, %arg1: i32) -> (i32, i32) {
    %c0_i32 = arith.constant 0 : i32
    %c0_i32_0 = arith.constant 0 : i32
    return %c0_i32, %arg1 : i32, i32
  }
  func.func @transform_2(%arg0: i32, %arg1: i32) -> (i32, i32) {
    %c0_i32 = arith.constant 0 : i32
    %c0_i32_0 = arith.constant 0 : i32
    return %c0_i32, %arg1 : i32, i32
  }
  func.func @transform_3(%arg0: i32, %arg1: i32) -> (i32, i32) {
    %c0_i32 = arith.constant 0 : i32
    return %arg0, %arg1 : i32, i32
  }
}

module attributes {stable_mosaic.version = 11 : i64} {
  func.func @_attn_kernel(%arg0: i32, %arg1: memref<8x32xbf16, #tpu.memory_space<vmem>>, %arg2: memref<8x32xbf16, #tpu.memory_space<vmem>>, %arg3: memref<8x32xbf16, #tpu.memory_space<vmem>>, %arg4: memref<1x8x8xf32, #tpu.memory_space<vmem>>, %arg5: memref<8x32xbf16, #tpu.memory_space<vmem>>) attributes {dimension_semantics = [#tpu.dimension_semantics<parallel>], iteration_bounds = array<i64: 2>, scalar_prefetch = 0 : i64, scratch_operands = 0 : i64, tpu.core_type = #tpu.core_type<tc>, window_params = [{transform_indices = @transform_0, window_bounds = array<i64: 8, 32>}, {transform_indices = @transform_1, window_bounds = array<i64: 8, 32>}, {transform_indices = @transform_2, window_bounds = array<i64: 8, 32>}, {transform_indices = @transform_3, window_bounds = array<i64: 1, 8, 8>}, {transform_indices = @transform_4, window_bounds = array<i64: 8, 32>}]} {
    %c0 = arith.constant 0 : index
    %c0_0 = arith.constant 0 : index
    %c0_1 = arith.constant 0 : index
    %0 = vector.load %arg4[%c0, %c0_0, %c0_1] : memref<1x8x8xf32, #tpu.memory_space<vmem>>, vector<1x8x8xf32>
    %1 = vector.shape_cast %0 : vector<1x8x8xf32> to vector<8x8xf32>
    %c0_2 = arith.constant 0 : index
    %c0_3 = arith.constant 0 : index
    %2 = vector.load %arg1[%c0_2, %c0_3] : memref<8x32xbf16, #tpu.memory_space<vmem>>, vector<8x8xbf16>
    %c0_4 = arith.constant 0 : index
    %c0_5 = arith.constant 0 : index
    %3 = vector.load %arg2[%c0_4, %c0_5] : memref<8x32xbf16, #tpu.memory_space<vmem>>, vector<8x8xbf16>
    %c0_6 = arith.constant 0 : index
    %c0_7 = arith.constant 0 : index
    %4 = vector.load %arg3[%c0_6, %c0_7] : memref<8x32xbf16, #tpu.memory_space<vmem>>, vector<8x8xbf16>
    %cst = arith.constant dense<0.000000e+00> : vector<8x8xf32>
    %5 = tpu.matmul %2, %3, %cst {dimension_numbers = #tpu.dot_dimension_numbers<[1], [1], [0], [0], [0, 0, 1, 0], [], []>} : vector<8x8xbf16>, vector<8x8xbf16>, vector<8x8xf32> -> vector<8x8xf32>
    %cst_8 = arith.constant 0.353553385 : f32
    %6 = vector.broadcast %cst_8 : f32 to vector<8x8xf32>
    %7 = arith.mulf %5, %6 : vector<8x8xf32>
    %cst_9 = arith.constant 0.000000e+00 : f32
    %8 = vector.broadcast %cst_9 : f32 to vector<8x8xf32>
    %9 = arith.cmpf ogt, %1, %8 : vector<8x8xf32>
    %cst_10 = arith.constant -1.000000e+04 : f32
    %10 = vector.broadcast %cst_10 : f32 to vector<8x8xf32>
    %11 = arith.select %9, %7, %10 : vector<8x8xi1>, vector<8x8xf32>
    %cst_11 = arith.constant dense<0xFF800000> : vector<8xf32>
    %12 = vector.multi_reduction <maximumf>, %11, %cst_11 [1] : vector<8x8xf32> to vector<8xf32>
    %13 = vector.shape_cast %12 : vector<8xf32> to vector<8x1xf32>
    %14 = vector.broadcast %13 : vector<8x1xf32> to vector<8x8xf32>
    %15 = arith.subf %11, %14 : vector<8x8xf32>
    %16 = math.exp %15 : vector<8x8xf32>
    %cst_12 = arith.constant dense<0.000000e+00> : vector<8xf32>
    %17 = vector.multi_reduction <add>, %16, %cst_12 [1] : vector<8x8xf32> to vector<8xf32>
    %18 = vector.shape_cast %17 : vector<8xf32> to vector<8x1xf32>
    %19 = vector.broadcast %18 : vector<8x1xf32> to vector<8x8xf32>
    %20 = arith.divf %16, %19 : vector<8x8xf32>
    %21 = arith.truncf %20 : vector<8x8xf32> to vector<8x8xbf16>
    %cst_13 = arith.constant dense<0.000000e+00> : vector<8x8xf32>
    %22 = tpu.matmul %21, %4, %cst_13 {dimension_numbers = #tpu.dot_dimension_numbers<[1], [0], [0], [1], [0, 0, 1, 1], [], []>} : vector<8x8xbf16>, vector<8x8xbf16>, vector<8x8xf32> -> vector<8x8xf32>
    %23 = arith.truncf %22 : vector<8x8xf32> to vector<8x8xbf16>
    %c0_14 = arith.constant 0 : index
    %c0_15 = arith.constant 0 : index
    %24 = vector.load %arg5[%c0_14, %c0_15] : memref<8x32xbf16, #tpu.memory_space<vmem>>, vector<8x8xbf16>
    tpu.vector_store %arg5[%c0_14, %c0_15], %23 {strides = array<i32>} : memref<8x32xbf16, #tpu.memory_space<vmem>>, vector<8x8xbf16>,
    %c0_16 = arith.constant 0 : index
    %c8 = arith.constant 8 : index
    %25 = vector.load %arg1[%c0_16, %c8] : memref<8x32xbf16, #tpu.memory_space<vmem>>, vector<8x8xbf16>
    %c0_17 = arith.constant 0 : index
    %c8_18 = arith.constant 8 : index
    %26 = vector.load %arg2[%c0_17, %c8_18] : memref<8x32xbf16, #tpu.memory_space<vmem>>, vector<8x8xbf16>
    %c0_19 = arith.constant 0 : index
    %c8_20 = arith.constant 8 : index
    %27 = vector.load %arg3[%c0_19, %c8_20] : memref<8x32xbf16, #tpu.memory_space<vmem>>, vector<8x8xbf16>
    %cst_21 = arith.constant dense<0.000000e+00> : vector<8x8xf32>
    %28 = tpu.matmul %25, %26, %cst_21 {dimension_numbers = #tpu.dot_dimension_numbers<[1], [1], [0], [0], [0, 0, 1, 0], [], []>} : vector<8x8xbf16>, vector<8x8xbf16>, vector<8x8xf32> -> vector<8x8xf32>
    %cst_22 = arith.constant 0.353553385 : f32
    %29 = vector.broadcast %cst_22 : f32 to vector<8x8xf32>
    %30 = arith.mulf %28, %29 : vector<8x8xf32>
    %cst_23 = arith.constant 0.000000e+00 : f32
    %31 = vector.broadcast %cst_23 : f32 to vector<8x8xf32>
    %32 = arith.cmpf ogt, %1, %31 : vector<8x8xf32>
    %cst_24 = arith.constant -1.000000e+04 : f32
    %33 = vector.broadcast %cst_24 : f32 to vector<8x8xf32>
    %34 = arith.select %32, %30, %33 : vector<8x8xi1>, vector<8x8xf32>
    %cst_25 = arith.constant dense<0xFF800000> : vector<8xf32>
    %35 = vector.multi_reduction <maximumf>, %34, %cst_25 [1] : vector<8x8xf32> to vector<8xf32>
    %36 = vector.shape_cast %35 : vector<8xf32> to vector<8x1xf32>
    %37 = vector.broadcast %36 : vector<8x1xf32> to vector<8x8xf32>
    %38 = arith.subf %34, %37 : vector<8x8xf32>
    %39 = math.exp %38 : vector<8x8xf32>
    %cst_26 = arith.constant dense<0.000000e+00> : vector<8xf32>
    %40 = vector.multi_reduction <add>, %39, %cst_26 [1] : vector<8x8xf32> to vector<8xf32>
    %41 = vector.shape_cast %40 : vector<8xf32> to vector<8x1xf32>
    %42 = vector.broadcast %41 : vector<8x1xf32> to vector<8x8xf32>
    %43 = arith.divf %39, %42 : vector<8x8xf32>
    %44 = arith.truncf %43 : vector<8x8xf32> to vector<8x8xbf16>
    %cst_27 = arith.constant dense<0.000000e+00> : vector<8x8xf32>
    %45 = tpu.matmul %44, %27, %cst_27 {dimension_numbers = #tpu.dot_dimension_numbers<[1], [0], [0], [1], [0, 0, 1, 1], [], []>} : vector<8x8xbf16>, vector<8x8xbf16>, vector<8x8xf32> -> vector<8x8xf32>
    %46 = arith.truncf %45 : vector<8x8xf32> to vector<8x8xbf16>
    %c0_28 = arith.constant 0 : index
    %c8_29 = arith.constant 8 : index
    %47 = vector.load %arg5[%c0_28, %c8_29] : memref<8x32xbf16, #tpu.memory_space<vmem>>, vector<8x8xbf16>
    tpu.vector_store %arg5[%c0_28, %c8_29], %46 {strides = array<i32>} : memref<8x32xbf16, #tpu.memory_space<vmem>>, vector<8x8xbf16>,
    %c0_30 = arith.constant 0 : index
    %c16 = arith.constant 16 : index
    %48 = vector.load %arg1[%c0_30, %c16] : memref<8x32xbf16, #tpu.memory_space<vmem>>, vector<8x8xbf16>
    %c0_31 = arith.constant 0 : index
    %c16_32 = arith.constant 16 : index
    %49 = vector.load %arg2[%c0_31, %c16_32] : memref<8x32xbf16, #tpu.memory_space<vmem>>, vector<8x8xbf16>
    %c0_33 = arith.constant 0 : index
    %c16_34 = arith.constant 16 : index
    %50 = vector.load %arg3[%c0_33, %c16_34] : memref<8x32xbf16, #tpu.memory_space<vmem>>, vector<8x8xbf16>
    %cst_35 = arith.constant dense<0.000000e+00> : vector<8x8xf32>
    %51 = tpu.matmul %48, %49, %cst_35 {dimension_numbers = #tpu.dot_dimension_numbers<[1], [1], [0], [0], [0, 0, 1, 0], [], []>} : vector<8x8xbf16>, vector<8x8xbf16>, vector<8x8xf32> -> vector<8x8xf32>
    %cst_36 = arith.constant 0.353553385 : f32
    %52 = vector.broadcast %cst_36 : f32 to vector<8x8xf32>
    %53 = arith.mulf %51, %52 : vector<8x8xf32>
    %cst_37 = arith.constant 0.000000e+00 : f32
    %54 = vector.broadcast %cst_37 : f32 to vector<8x8xf32>
    %55 = arith.cmpf ogt, %1, %54 : vector<8x8xf32>
    %cst_38 = arith.constant -1.000000e+04 : f32
    %56 = vector.broadcast %cst_38 : f32 to vector<8x8xf32>
    %57 = arith.select %55, %53, %56 : vector<8x8xi1>, vector<8x8xf32>
    %cst_39 = arith.constant dense<0xFF800000> : vector<8xf32>
    %58 = vector.multi_reduction <maximumf>, %57, %cst_39 [1] : vector<8x8xf32> to vector<8xf32>
    %59 = vector.shape_cast %58 : vector<8xf32> to vector<8x1xf32>
    %60 = vector.broadcast %59 : vector<8x1xf32> to vector<8x8xf32>
    %61 = arith.subf %57, %60 : vector<8x8xf32>
    %62 = math.exp %61 : vector<8x8xf32>
    %cst_40 = arith.constant dense<0.000000e+00> : vector<8xf32>
    %63 = vector.multi_reduction <add>, %62, %cst_40 [1] : vector<8x8xf32> to vector<8xf32>
    %64 = vector.shape_cast %63 : vector<8xf32> to vector<8x1xf32>
    %65 = vector.broadcast %64 : vector<8x1xf32> to vector<8x8xf32>
    %66 = arith.divf %62, %65 : vector<8x8xf32>
    %67 = arith.truncf %66 : vector<8x8xf32> to vector<8x8xbf16>
    %cst_41 = arith.constant dense<0.000000e+00> : vector<8x8xf32>
    %68 = tpu.matmul %67, %50, %cst_41 {dimension_numbers = #tpu.dot_dimension_numbers<[1], [0], [0], [1], [0, 0, 1, 1], [], []>} : vector<8x8xbf16>, vector<8x8xbf16>, vector<8x8xf32> -> vector<8x8xf32>
    %69 = arith.truncf %68 : vector<8x8xf32> to vector<8x8xbf16>
    %c0_42 = arith.constant 0 : index
    %c16_43 = arith.constant 16 : index
    %70 = vector.load %arg5[%c0_42, %c16_43] : memref<8x32xbf16, #tpu.memory_space<vmem>>, vector<8x8xbf16>
    tpu.vector_store %arg5[%c0_42, %c16_43], %69 {strides = array<i32>} : memref<8x32xbf16, #tpu.memory_space<vmem>>, vector<8x8xbf16>,
    %c0_44 = arith.constant 0 : index
    %c24 = arith.constant 24 : index
    %71 = vector.load %arg1[%c0_44, %c24] : memref<8x32xbf16, #tpu.memory_space<vmem>>, vector<8x8xbf16>
    %c0_45 = arith.constant 0 : index
    %c24_46 = arith.constant 24 : index
    %72 = vector.load %arg2[%c0_45, %c24_46] : memref<8x32xbf16, #tpu.memory_space<vmem>>, vector<8x8xbf16>
    %c0_47 = arith.constant 0 : index
    %c24_48 = arith.constant 24 : index
    %73 = vector.load %arg3[%c0_47, %c24_48] : memref<8x32xbf16, #tpu.memory_space<vmem>>, vector<8x8xbf16>
    %cst_49 = arith.constant dense<0.000000e+00> : vector<8x8xf32>
    %74 = tpu.matmul %71, %72, %cst_49 {dimension_numbers = #tpu.dot_dimension_numbers<[1], [1], [0], [0], [0, 0, 1, 0], [], []>} : vector<8x8xbf16>, vector<8x8xbf16>, vector<8x8xf32> -> vector<8x8xf32>
    %cst_50 = arith.constant 0.353553385 : f32
    %75 = vector.broadcast %cst_50 : f32 to vector<8x8xf32>
    %76 = arith.mulf %74, %75 : vector<8x8xf32>
    %cst_51 = arith.constant 0.000000e+00 : f32
    %77 = vector.broadcast %cst_51 : f32 to vector<8x8xf32>
    %78 = arith.cmpf ogt, %1, %77 : vector<8x8xf32>
    %cst_52 = arith.constant -1.000000e+04 : f32
    %79 = vector.broadcast %cst_52 : f32 to vector<8x8xf32>
    %80 = arith.select %78, %76, %79 : vector<8x8xi1>, vector<8x8xf32>
    %cst_53 = arith.constant dense<0xFF800000> : vector<8xf32>
    %81 = vector.multi_reduction <maximumf>, %80, %cst_53 [1] : vector<8x8xf32> to vector<8xf32>
    %82 = vector.shape_cast %81 : vector<8xf32> to vector<8x1xf32>
    %83 = vector.broadcast %82 : vector<8x1xf32> to vector<8x8xf32>
    %84 = arith.subf %80, %83 : vector<8x8xf32>
    %85 = math.exp %84 : vector<8x8xf32>
    %cst_54 = arith.constant dense<0.000000e+00> : vector<8xf32>
    %86 = vector.multi_reduction <add>, %85, %cst_54 [1] : vector<8x8xf32> to vector<8xf32>
    %87 = vector.shape_cast %86 : vector<8xf32> to vector<8x1xf32>
    %88 = vector.broadcast %87 : vector<8x1xf32> to vector<8x8xf32>
    %89 = arith.divf %85, %88 : vector<8x8xf32>
    %90 = arith.truncf %89 : vector<8x8xf32> to vector<8x8xbf16>
    %cst_55 = arith.constant dense<0.000000e+00> : vector<8x8xf32>
    %91 = tpu.matmul %90, %73, %cst_55 {dimension_numbers = #tpu.dot_dimension_numbers<[1], [0], [0], [1], [0, 0, 1, 1], [], []>} : vector<8x8xbf16>, vector<8x8xbf16>, vector<8x8xf32> -> vector<8x8xf32>
    %92 = arith.truncf %91 : vector<8x8xf32> to vector<8x8xbf16>
    %c0_56 = arith.constant 0 : index
    %c24_57 = arith.constant 24 : index
    %93 = vector.load %arg5[%c0_56, %c24_57] : memref<8x32xbf16, #tpu.memory_space<vmem>>, vector<8x8xbf16>
    tpu.vector_store %arg5[%c0_56, %c24_57], %92 {strides = array<i32>} : memref<8x32xbf16, #tpu.memory_space<vmem>>, vector<8x8xbf16>,
    return
  }
  func.func @transform_0(%arg0: i32) -> (i32, i32) {
    %c0_i32 = arith.constant 0 : i32
    %c0_i32_0 = arith.constant 0 : i32
    return %arg0, %c0_i32 : i32, i32
  }
  func.func @transform_1(%arg0: i32) -> (i32, i32) {
    %c0_i32 = arith.constant 0 : i32
    %c0_i32_0 = arith.constant 0 : i32
    return %arg0, %c0_i32 : i32, i32
  }
  func.func @transform_2(%arg0: i32) -> (i32, i32) {
    %c0_i32 = arith.constant 0 : i32
    %c0_i32_0 = arith.constant 0 : i32
    return %arg0, %c0_i32 : i32, i32
  }
  func.func @transform_3(%arg0: i32) -> (i32, i32, i32) {
    %c0_i32 = arith.constant 0 : i32
    %c0_i32_0 = arith.constant 0 : i32
    %c0_i32_1 = arith.constant 0 : i32
    return %arg0, %c0_i32, %c0_i32_0 : i32, i32, i32
  }
  func.func @transform_4(%arg0: i32) -> (i32, i32) {
    %c0_i32 = arith.constant 0 : i32
    %c0_i32_0 = arith.constant 0 : i32
    return %arg0, %c0_i32 : i32, i32
  }
}

module attributes {stable_mosaic.version = 11 : i64} {
  func.func @_linear_kernel(%arg0: i32, %arg1: i32, %arg2: memref<16x32xbf16, #tpu.memory_space<vmem>>, %arg3: memref<32x32xbf16, #tpu.memory_space<vmem>>, %arg4: memref<1x32xf32, #tpu.memory_space<vmem>>, %arg5: memref<16x32xf32, #tpu.memory_space<vmem>>) attributes {dimension_semantics = [#tpu.dimension_semantics<parallel>, #tpu.dimension_semantics<parallel>], iteration_bounds = array<i64: 1, 1>, scalar_prefetch = 0 : i64, scratch_operands = 0 : i64, tpu.core_type = #tpu.core_type<tc>, window_params = [{transform_indices = @transform_0, window_bounds = array<i64: 16, 32>}, {transform_indices = @transform_1, window_bounds = array<i64: 32, 32>}, {transform_indices = @transform_2, window_bounds = array<i64: 1, 32>}, {transform_indices = @transform_3, window_bounds = array<i64: 16, 32>}]} {
    %c0 = arith.constant 0 : index
    %c0_0 = arith.constant 0 : index
    %0 = vector.load %arg2[%c0, %c0_0] : memref<16x32xbf16, #tpu.memory_space<vmem>>, vector<16x32xbf16>
    %c0_1 = arith.constant 0 : index
    %c0_2 = arith.constant 0 : index
    %1 = vector.load %arg3[%c0_1, %c0_2] : memref<32x32xbf16, #tpu.memory_space<vmem>>, vector<32x32xbf16>
    %cst = arith.constant dense<0.000000e+00> : vector<16x32xf32>
    %2 = tpu.matmul %0, %1, %cst {dimension_numbers = #tpu.dot_dimension_numbers<[1], [0], [0], [1], [0, 0, 1, 1], [], []>} : vector<16x32xbf16>, vector<32x32xbf16>, vector<16x32xf32> -> vector<16x32xf32>
    %c0_3 = arith.constant 0 : index
    %c0_4 = arith.constant 0 : index
    %3 = vector.load %arg4[%c0_3, %c0_4] : memref<1x32xf32, #tpu.memory_space<vmem>>, vector<1x32xf32>
    %4 = vector.broadcast %3 : vector<1x32xf32> to vector<16x32xf32>
    %5 = arith.addf %2, %4 : vector<16x32xf32>
    %c0_5 = arith.constant 0 : index
    %c0_6 = arith.constant 0 : index
    %6 = vector.load %arg5[%c0_5, %c0_6] : memref<16x32xf32, #tpu.memory_space<vmem>>, vector<16x32xf32>
    tpu.vector_store %arg5[%c0_5, %c0_6], %5 {strides = array<i32>} : memref<16x32xf32, #tpu.memory_space<vmem>>, vector<16x32xf32>,
    return
  }
  func.func @transform_0(%arg0: i32, %arg1: i32) -> (i32, i32) {
    %c0_i32 = arith.constant 0 : i32
    %c0_i32_0 = arith.constant 0 : i32
    return %arg0, %c0_i32 : i32, i32
  }
  func.func @transform_1(%arg0: i32, %arg1: i32) -> (i32, i32) {
    %c0_i32 = arith.constant 0 : i32
    %c0_i32_0 = arith.constant 0 : i32
    return %c0_i32, %arg1 : i32, i32
  }
  func.func @transform_2(%arg0: i32, %arg1: i32) -> (i32, i32) {
    %c0_i32 = arith.constant 0 : i32
    %c0_i32_0 = arith.constant 0 : i32
    return %c0_i32, %arg1 : i32, i32
  }
  func.func @transform_3(%arg0: i32, %arg1: i32) -> (i32, i32) {
    %c0_i32 = arith.constant 0 : i32
    return %arg0, %arg1 : i32, i32
  }
}

module attributes {stable_mosaic.version = 11 : i64} {
  func.func @_ffn_ln_kernel(%arg0: i32, %arg1: memref<16x32xbf16, #tpu.memory_space<vmem>>, %arg2: memref<32x64xbf16, #tpu.memory_space<vmem>>, %arg3: memref<1x64xf32, #tpu.memory_space<vmem>>, %arg4: memref<64x32xbf16, #tpu.memory_space<vmem>>, %arg5: memref<1x32xf32, #tpu.memory_space<vmem>>, %arg6: memref<1x32xf32, #tpu.memory_space<vmem>>, %arg7: memref<1x32xf32, #tpu.memory_space<vmem>>, %arg8: memref<16x32xbf16, #tpu.memory_space<vmem>>) attributes {dimension_semantics = [#tpu.dimension_semantics<parallel>], iteration_bounds = array<i64: 1>, scalar_prefetch = 0 : i64, scratch_operands = 0 : i64, tpu.core_type = #tpu.core_type<tc>, window_params = [{transform_indices = @transform_0, window_bounds = array<i64: 16, 32>}, {pipeline_mode = #tpu.pipeline_mode<synchronous>, transform_indices = @transform_1, window_bounds = array<i64: 32, 64>}, {pipeline_mode = #tpu.pipeline_mode<synchronous>, transform_indices = @transform_2, window_bounds = array<i64: 1, 64>}, {pipeline_mode = #tpu.pipeline_mode<synchronous>, transform_indices = @transform_3, window_bounds = array<i64: 64, 32>}, {pipeline_mode = #tpu.pipeline_mode<synchronous>, transform_indices = @transform_4, window_bounds = array<i64: 1, 32>}, {pipeline_mode = #tpu.pipeline_mode<synchronous>, transform_indices = @transform_5, window_bounds = array<i64: 1, 32>}, {pipeline_mode = #tpu.pipeline_mode<synchronous>, transform_indices = @transform_6, window_bounds = array<i64: 1, 32>}, {transform_indices = @transform_7, window_bounds = array<i64: 16, 32>}]} {
    %c0 = arith.constant 0 : index
    %c0_0 = arith.constant 0 : index
    %0 = vector.load %arg1[%c0, %c0_0] : memref<16x32xbf16, #tpu.memory_space<vmem>>, vector<16x32xbf16>
    %c0_1 = arith.constant 0 : index
    %c0_2 = arith.constant 0 : index
    %1 = vector.load %arg2[%c0_1, %c0_2] : memref<32x64xbf16, #tpu.memory_space<vmem>>, vector<32x64xbf16>
    %cst = arith.constant dense<0.000000e+00> : vector<16x64xf32>
    %2 = tpu.matmul %0, %1, %cst {dimension_numbers = #tpu.dot_dimension_numbers<[1], [0], [0], [1], [0, 0, 1, 1], [], []>} : vector<16x32xbf16>, vector<32x64xbf16>, vector<16x64xf32> -> vector<16x64xf32>
    %c0_3 = arith.constant 0 : index
    %c0_4 = arith.constant 0 : index
    %3 = vector.load %arg3[%c0_3, %c0_4] : memref<1x64xf32, #tpu.memory_space<vmem>>, vector<1x64xf32>
    %4 = vector.broadcast %3 : vector<1x64xf32> to vector<16x64xf32>
    %5 = arith.addf %2, %4 : vector<16x64xf32>
    %cst_5 = arith.constant 0.000000e+00 : f32
    %6 = vector.broadcast %cst_5 : f32 to vector<16x64xf32>
    %7 = arith.maximumf %5, %6 : vector<16x64xf32>
    %8 = arith.truncf %7 : vector<16x64xf32> to vector<16x64xbf16>
    %c0_6 = arith.constant 0 : index
    %c0_7 = arith.constant 0 : index
    %9 = vector.load %arg4[%c0_6, %c0_7] : memref<64x32xbf16, #tpu.memory_space<vmem>>, vector<64x32xbf16>
    %cst_8 = arith.constant dense<0.000000e+00> : vector<16x32xf32>
    %10 = tpu.matmul %8, %9, %cst_8 {dimension_numbers = #tpu.dot_dimension_numbers<[1], [0], [0], [1], [0, 0, 1, 1], [], []>} : vector<16x64xbf16>, vector<64x32xbf16>, vector<16x32xf32> -> vector<16x32xf32>
    %c0_9 = arith.constant 0 : index
    %c0_10 = arith.constant 0 : index
    %11 = vector.load %arg5[%c0_9, %c0_10] : memref<1x32xf32, #tpu.memory_space<vmem>>, vector<1x32xf32>
    %12 = vector.broadcast %11 : vector<1x32xf32> to vector<16x32xf32>
    %13 = arith.addf %10, %12 : vector<16x32xf32>
    %14 = arith.extf %0 : vector<16x32xbf16> to vector<16x32xf32>
    %15 = arith.addf %13, %14 : vector<16x32xf32>
    %cst_11 = arith.constant dense<0.000000e+00> : vector<16xf32>
    %16 = vector.multi_reduction <add>, %15, %cst_11 [1] : vector<16x32xf32> to vector<16xf32>
    %17 = vector.shape_cast %16 : vector<16xf32> to vector<16x1xf32>
    %cst_12 = arith.constant 3.200000e+01 : f32
    %18 = vector.broadcast %cst_12 : f32 to vector<16x1xf32>
    %19 = arith.divf %17, %18 : vector<16x1xf32>
    %20 = vector.broadcast %19 : vector<16x1xf32> to vector<16x32xf32>
    %21 = arith.subf %15, %20 : vector<16x32xf32>
    %22 = arith.mulf %21, %21 : vector<16x32xf32>
    %cst_13 = arith.constant dense<0.000000e+00> : vector<16xf32>
    %23 = vector.multi_reduction <add>, %22, %cst_13 [1] : vector<16x32xf32> to vector<16xf32>
    %24 = vector.shape_cast %23 : vector<16xf32> to vector<16x1xf32>
    %cst_14 = arith.constant 3.200000e+01 : f32
    %25 = vector.broadcast %cst_14 : f32 to vector<16x1xf32>
    %26 = arith.divf %24, %25 : vector<16x1xf32>
    %27 = vector.broadcast %19 : vector<16x1xf32> to vector<16x32xf32>
    %28 = arith.subf %15, %27 : vector<16x32xf32>
    %cst_15 = arith.constant 9.99999996E-13 : f32
    %29 = vector.broadcast %cst_15 : f32 to vector<16x1xf32>
    %30 = arith.addf %26, %29 : vector<16x1xf32>
    %31 = math.rsqrt %30 : vector<16x1xf32>
    %32 = vector.broadcast %31 : vector<16x1xf32> to vector<16x32xf32>
    %33 = arith.mulf %28, %32 : vector<16x32xf32>
    %c0_16 = arith.constant 0 : index
    %c0_17 = arith.constant 0 : index
    %34 = vector.load %arg6[%c0_16, %c0_17] : memref<1x32xf32, #tpu.memory_space<vmem>>, vector<1x32xf32>
    %35 = vector.broadcast %34 : vector<1x32xf32> to vector<16x32xf32>
    %36 = arith.mulf %33, %35 : vector<16x32xf32>
    %c0_18 = arith.constant 0 : index
    %c0_19 = arith.constant 0 : index
    %37 = vector.load %arg7[%c0_18, %c0_19] : memref<1x32xf32, #tpu.memory_space<vmem>>, vector<1x32xf32>
    %38 = vector.broadcast %37 : vector<1x32xf32> to vector<16x32xf32>
    %39 = arith.addf %36, %38 : vector<16x32xf32>
    %40 = arith.truncf %39 : vector<16x32xf32> to vector<16x32xbf16>
    %c0_20 = arith.constant 0 : index
    %c0_21 = arith.constant 0 : index
    %41 = vector.load %arg8[%c0_20, %c0_21] : memref<16x32xbf16, #tpu.memory_space<vmem>>, vector<16x32xbf16>
    tpu.vector_store %arg8[%c0_20, %c0_21], %40 {strides = array<i32>} : memref<16x32xbf16, #tpu.memory_space<vmem>>, vector<16x32xbf16>,
    return
  }
  func.func @transform_0(%arg0: i32) -> (i32, i32) {
    %c0_i32 = arith.constant 0 : i32
    %c0_i32_0 = arith.constant 0 : i32
    return %arg0, %c0_i32 : i32, i32
  }
  func.func @transform_1(%arg0: i32) -> (i32, i32) {
    %c0_i32 = arith.constant 0 : i32
    %c0_i32_0 = arith.constant 0 : i32
    %c0_i32_1 = arith.constant 0 : i32
    return %c0_i32, %c0_i32_0 : i32, i32
  }
  func.func @transform_2(%arg0: i32) -> (i32, i32) {
    %c0_i32 = arith.constant 0 : i32
    %c0_i32_0 = arith.constant 0 : i32
    %c0_i32_1 = arith.constant 0 : i32
    return %c0_i32, %c0_i32_0 : i32, i32
  }
  func.func @transform_3(%arg0: i32) -> (i32, i32) {
    %c0_i32 = arith.constant 0 : i32
    %c0_i32_0 = arith.constant 0 : i32
    %c0_i32_1 = arith.constant 0 : i32
    return %c0_i32, %c0_i32_0 : i32, i32
  }
  func.func @transform_4(%arg0: i32) -> (i32, i32) {
    %c0_i32 = arith.constant 0 : i32
    %c0_i32_0 = arith.constant 0 : i32
    %c0_i32_1 = arith.constant 0 : i32
    return %c0_i32, %c0_i32_0 : i32, i32
  }
  func.func @transform_5(%arg0: i32) -> (i32, i32) {
    %c0_i32 = arith.constant 0 : i32
    %c0_i32_0 = arith.constant 0 : i32
    %c0_i32_1 = arith.constant 0 : i32
    return %c0_i32, %c0_i32_0 : i32, i32
  }
  func.func @transform_6(%arg0: i32) -> (i32, i32) {
    %c0_i32 = arith.constant 0 : i32
    %c0_i32_0 = arith.constant 0 : i32
    %c0_i32_1 = arith.constant 0 : i32
    return %c0_i32, %c0_i32_0 : i32, i32
  }
  func.func @transform_7(%arg0: i32) -> (i32, i32) {
    %c0_i32 = arith.constant 0 : i32
    %c0_i32_0 = arith.constant 0 : i32
    return %arg0, %c0_i32 : i32, i32
  }
}

module attributes {stable_mosaic.version = 11 : i64} {
  func.func @_kv_kernel(%arg0: i32, %arg1: memref<16x32xbf16, #tpu.memory_space<vmem>>, %arg2: memref<32x32xbf16, #tpu.memory_space<vmem>>, %arg3: memref<1x32xf32, #tpu.memory_space<vmem>>, %arg4: memref<32x32xbf16, #tpu.memory_space<vmem>>, %arg5: memref<1x32xf32, #tpu.memory_space<vmem>>, %arg6: memref<16x32xbf16, #tpu.memory_space<vmem>>, %arg7: memref<16x32xbf16, #tpu.memory_space<vmem>>) attributes {dimension_semantics = [#tpu.dimension_semantics<parallel>], iteration_bounds = array<i64: 1>, scalar_prefetch = 0 : i64, scratch_operands = 0 : i64, tpu.core_type = #tpu.core_type<tc>, window_params = [{transform_indices = @transform_0, window_bounds = array<i64: 16, 32>}, {pipeline_mode = #tpu.pipeline_mode<synchronous>, transform_indices = @transform_1, window_bounds = array<i64: 32, 32>}, {pipeline_mode = #tpu.pipeline_mode<synchronous>, transform_indices = @transform_2, window_bounds = array<i64: 1, 32>}, {pipeline_mode = #tpu.pipeline_mode<synchronous>, transform_indices = @transform_3, window_bounds = array<i64: 32, 32>}, {pipeline_mode = #tpu.pipeline_mode<synchronous>, transform_indices = @transform_4, window_bounds = array<i64: 1, 32>}, {transform_indices = @transform_5, window_bounds = array<i64: 16, 32>}, {transform_indices = @transform_6, window_bounds = array<i64: 16, 32>}]} {
    %c0 = arith.constant 0 : index
    %c0_0 = arith.constant 0 : index
    %0 = vector.load %arg1[%c0, %c0_0] : memref<16x32xbf16, #tpu.memory_space<vmem>>, vector<16x32xbf16>
    %c0_1 = arith.constant 0 : index
    %c0_2 = arith.constant 0 : index
    %1 = vector.load %arg2[%c0_1, %c0_2] : memref<32x32xbf16, #tpu.memory_space<vmem>>, vector<32x32xbf16>
    %cst = arith.constant dense<0.000000e+00> : vector<16x32xf32>
    %2 = tpu.matmul %0, %1, %cst {dimension_numbers = #tpu.dot_dimension_numbers<[1], [0], [0], [1], [0, 0, 1, 1], [], []>} : vector<16x32xbf16>, vector<32x32xbf16>, vector<16x32xf32> -> vector<16x32xf32>
    %c0_3 = arith.constant 0 : index
    %c0_4 = arith.constant 0 : index
    %3 = vector.load %arg3[%c0_3, %c0_4] : memref<1x32xf32, #tpu.memory_space<vmem>>, vector<1x32xf32>
    %4 = vector.broadcast %3 : vector<1x32xf32> to vector<16x32xf32>
    %5 = arith.addf %2, %4 : vector<16x32xf32>
    %c0_5 = arith.constant 0 : index
    %c0_6 = arith.constant 0 : index
    %6 = vector.load %arg4[%c0_5, %c0_6] : memref<32x32xbf16, #tpu.memory_space<vmem>>, vector<32x32xbf16>
    %cst_7 = arith.constant dense<0.000000e+00> : vector<16x32xf32>
    %7 = tpu.matmul %0, %6, %cst_7 {dimension_numbers = #tpu.dot_dimension_numbers<[1], [0], [0], [1], [0, 0, 1, 1], [], []>} : vector<16x32xbf16>, vector<32x32xbf16>, vector<16x32xf32> -> vector<16x32xf32>
    %c0_8 = arith.constant 0 : index
    %c0_9 = arith.constant 0 : index
    %8 = vector.load %arg5[%c0_8, %c0_9] : memref<1x32xf32, #tpu.memory_space<vmem>>, vector<1x32xf32>
    %9 = vector.broadcast %8 : vector<1x32xf32> to vector<16x32xf32>
    %10 = arith.addf %7, %9 : vector<16x32xf32>
    %11 = arith.truncf %5 : vector<16x32xf32> to vector<16x32xbf16>
    %c0_10 = arith.constant 0 : index
    %c0_11 = arith.constant 0 : index
    %12 = vector.load %arg6[%c0_10, %c0_11] : memref<16x32xbf16, #tpu.memory_space<vmem>>, vector<16x32xbf16>
    tpu.vector_store %arg6[%c0_10, %c0_11], %11 {strides = array<i32>} : memref<16x32xbf16, #tpu.memory_space<vmem>>, vector<16x32xbf16>,
    %13 = arith.truncf %10 : vector<16x32xf32> to vector<16x32xbf16>
    %c0_12 = arith.constant 0 : index
    %c0_13 = arith.constant 0 : index
    %14 = vector.load %arg7[%c0_12, %c0_13] : memref<16x32xbf16, #tpu.memory_space<vmem>>, vector<16x32xbf16>
    tpu.vector_store %arg7[%c0_12, %c0_13], %13 {strides = array<i32>} : memref<16x32xbf16, #tpu.memory_space<vmem>>, vector<16x32xbf16>,
    return
  }
  func.func @transform_0(%arg0: i32) -> (i32, i32) {
    %c0_i32 = arith.constant 0 : i32
    %c0_i32_0 = arith.constant 0 : i32
    return %arg0, %c0_i32 : i32, i32
  }
  func.func @transform_1(%arg0: i32) -> (i32, i32) {
    %c0_i32 = arith.constant 0 : i32
    %c0_i32_0 = arith.constant 0 : i32
    %c0_i32_1 = arith.constant 0 : i32
    return %c0_i32, %c0_i32_0 : i32, i32
  }
  func.func @transform_2(%arg0: i32) -> (i32, i32) {
    %c0_i32 = arith.constant 0 : i32
    %c0_i32_0 = arith.constant 0 : i32
    %c0_i32_1 = arith.constant 0 : i32
    return %c0_i32, %c0_i32_0 : i32, i32
  }
  func.func @transform_3(%arg0: i32) -> (i32, i32) {
    %c0_i32 = arith.constant 0 : i32
    %c0_i32_0 = arith.constant 0 : i32
    %c0_i32_1 = arith.constant 0 : i32
    return %c0_i32, %c0_i32_0 : i32, i32
  }
  func.func @transform_4(%arg0: i32) -> (i32, i32) {
    %c0_i32 = arith.constant 0 : i32
    %c0_i32_0 = arith.constant 0 : i32
    %c0_i32_1 = arith.constant 0 : i32
    return %c0_i32, %c0_i32_0 : i32, i32
  }
  func.func @transform_5(%arg0: i32) -> (i32, i32) {
    %c0_i32 = arith.constant 0 : i32
    %c0_i32_0 = arith.constant 0 : i32
    return %arg0, %c0_i32 : i32, i32
  }
  func.func @transform_6(%arg0: i32) -> (i32, i32) {
    %c0_i32 = arith.constant 0 : i32
    %c0_i32_0 = arith.constant 0 : i32
    return %arg0, %c0_i32 : i32, i32
  }
}

</mosaic_0001>

<bundles_post_ra>
// kernel: _lambda_.33
= control target key start
LH: loop header
LB: loop body
LE: loop exit
PB: predicated region body
PF: predicated region fallthrough
CT: control target
= control target key end

     0   :  { %v343_v0 = vmov 0.0   ;;  %vm344_vm0 = vmmov 0   ;;  %vm60_vm1 = vcmask 261120   ;;  %vm241_vm2 = vcmask 257024   ;;  %s452_s1 = inlined_call_operand.vmem [shape: bf16[32,32], index: 1, kind: input, shape index: {}]   ;;  %s453_s3 = inlined_call_operand.vmem [shape: bf16[32,32], index: 3, kind: input, shape index: {}]   ;;  %s454_s0 = inlined_call_operand.vmem [shape: bf16[16,32], index: 0, kind: input, shape index: {}]   ;;  %s455_s5 = inlined_call_operand.vmem [shape: bf16[32,32], index: 5, kind: input, shape index: {}]   ;;  %s456_s2 = inlined_call_operand.vmem [shape: f32[1,32], index: 2, kind: input, shape index: {}]   ;;  %s457_s4 = inlined_call_operand.vmem [shape: f32[1,32], index: 4, kind: input, shape index: {}]   ;;  %s458_s7 = inlined_call_operand.vmem [shape: bf16[16,32], index: 7, kind: output, shape index: {0}]   ;;  %s459_s6 = inlined_call_operand.vmem [shape: f32[1,32], index: 6, kind: input, shape index: {}]   ;;  %s460_s8 = inlined_call_operand.vmem [shape: bf16[16,32], index: 8, kind: output, shape index: {1}]   ;;  %s461_s9 = inlined_call_operand.vmem [shape: bf16[16,32], index: 9, kind: output, shape index: {2}]  }
   0x1   :  { %310 = vmatprep.subr.bf16.mxu0 %v343_v0  ;;  %v336_v1 = vld [vmem:[%s452_s1] sm:$0xff]   ;;  %318 = vmatprep.subr.bf16.mxu1 %v343_v0  ;;  %v337_v2 = vld [vmem:[%s452_s1 + $0x8] sm:$0xff]  }
   0x2   :  { %314 = vmatprep.mubr.msk.bf16.mxu0 %vm344_vm0, %v343_v0  ;;  %322 = vmatprep.mubr.msk.bf16.mxu1 %vm344_vm0, %v343_v0  ;;  %v338_v3 = vld [vmem:[%s453_s3] sm:$0xff]   ;;  %v341_v5 = vld [vmem:[%s453_s3 + $0x8] sm:$0xff]  }
   0x3   :  { %311 = vmatpush3.bf16.msra.mxu0 %v336_v1  ;;  %319 = vmatpush3.bf16.msra.mxu1 %v338_v3  ;;  %v339_v4 = vld [vmem:[%s454_s0] sm:$0xff]   ;;  %v342_v7 = vld [vmem:[%s455_s5 + $0x8] sm:$0xff]  }
   0x4   :  { %312 = vmatprep.subr.bf16.mxu0 %v343_v0  ;;  %320 = vmatprep.subr.bf16.mxu1 %v343_v0  ;;  %v340_v6 = vld [vmem:[%s455_s5] sm:$0xff]  }
   0x5   :  { %v276_v8 = vld [vmem:[%s456_s2] ss:$0 sm:$0xff] }
   0x6   :  { %v281_v10 = vld [vmem:[%s457_s4] ss:$0 sm:$0xff] }
   0x7   :  { %313 = vmatpush3.bf16.msra.mxu0 %v337_v2  ;;  %321 = vmatpush3.bf16.msra.mxu1 %v341_v5  ;;  %v285_v25 = vld [vmem:[%s459_s6] ss:$0 sm:$0xff] }
   0x8   :  { %326 = vmatprep.subr.bf16.mxu0 %v343_v0 }
   0xa   :  { %315 = vmatmul.mubr.msk.bf16.vlgmr.msra.gmra.mrb[0].mxu0 %vm60_vm1, %v339_v4  ;;  %323 = vmatmul.mubr.msk.bf16.vlgmr.msra.gmra.mrb[0].mxu1 %vm60_vm1, %v339_v4 }
   0xb   :  { %327 = vmatpush3.bf16.msra.mxu0 %v340_v6  ;;  %330 = vmatprep.mubr.msk.bf16.mxu0 %vm344_vm0, %v343_v0 }
   0xc   :  { %328 = vmatprep.subr.bf16.mxu0 %v343_v0 }
   0xf   :  { %329 = vmatpush3.bf16.msra.mxu0 %v342_v7 }
  0x12   :  { %331 = vmatmul.mubr.msk.bf16.vlgmr.msra.gmra.mrb[4].mxu0 %vm60_vm1, %v339_v4 }
  0xdd   :  { %v98_v9 = vpop.f32.mrb[0].mxu0  ;;  %v162_v14 = vpop.f32.mrb[0].mxu1 }
  0xde   :  { %v99_v11 = vadd.f32 %v276_v8, %v98_v9  ;;  %v316_v12 = vpop.f32.mrb[1].mxu0  ;;  %v163_v18 = vadd.f32 %v281_v10, %v162_v14  ;;  %v324_v19 = vpop.f32.mrb[1].mxu1 }
  0xdf   :  { %v101_v13 = vpop.f32.mrb[2].mxu0  ;;  %v165_v20 = vpop.f32.mrb[2].mxu1 }
  0xe0   :  { %v295_v15 = vpack.c.bf16 %v99_v11, %v99_v11  ;;  %v102_v16 = vadd.f32 %v276_v8, %v101_v13  ;;  %v317_v17 = vpop.f32.mrb[3].mxu0  ;;  %v297_v22 = vpack.c.bf16 %v163_v18, %v163_v18  ;;  %v166_v23 = vadd.f32 %v281_v10, %v165_v20  ;;  %v325_v24 = vpop.f32.mrb[3].mxu1 }
  0xe2   :  { %242 = vst.msk [vmem:[%s458_s7] sm:$0xf] %vm241_vm2, %v295_v15  ;;  %v296_v21 = vpack.c.bf16 %v102_v16, %v102_v16  ;;  %252 = vst.msk [vmem:[%s460_s8] sm:$0xf] %vm241_vm2, %v297_v22  ;;  %v298_v26 = vpack.c.bf16 %v166_v23, %v166_v23 }
  0xe4   :  { %243 = vst.msk [vmem:[%s458_s7 + $0x4] sm:$0xf] %vm241_vm2, %v296_v21  ;;  %253 = vst.msk [vmem:[%s460_s8 + $0x4] sm:$0xf] %vm241_vm2, %v298_v26 }
  0xe5   :  { %v226_v27 = vpop.f32.mrb[4].mxu0 }
  0xe6   :  { %v227_v28 = vadd.f32 %v285_v25, %v226_v27  ;;  %v332_v29 = vpop.f32.mrb[5].mxu0 }
  0xe7   :  { %v229_v30 = vpop.f32.mrb[6].mxu0 }
  0xe8   :  { %v299_v31 = vpack.c.bf16 %v227_v28, %v227_v28  ;;  %v230_v32 = vadd.f32 %v285_v25, %v229_v30  ;;  %v333_v33 = vpop.f32.mrb[7].mxu0 }
  0xea   :  { %262 = vst.msk [vmem:[%s461_s9] sm:$0xf] %vm241_vm2, %v299_v31  ;;  %v300_v34 = vpack.c.bf16 %v230_v32, %v230_v32 }
  0xec   :  { %263 = vst.msk [vmem:[%s461_s9 + $0x4] sm:$0xf] %vm241_vm2, %v300_v34 }

// kernel: _lambda_.35
= control target key start
LH: loop header
LB: loop body
LE: loop exit
PB: predicated region body
PF: predicated region fallthrough
CT: control target
= control target key end

     0   :  { %v200_v0 = vmov 0.0   ;;  %vm201_vm0 = vmmov 0   ;;  %vm54_vm1 = vcmask 261120   ;;  %vm158_vm2 = vcmask 257024   ;;  %s269_s1 = inlined_call_operand.vmem [shape: bf16[32,32], index: 1, kind: input, shape index: {}]   ;;  %s270_s0 = inlined_call_operand.vmem [shape: bf16[16,32], index: 0, kind: input, shape index: {}]   ;;  %s271_s3 = inlined_call_operand.vmem [shape: bf16[16,32], index: 3, kind: input, shape index: {}]   ;;  %s272_s2 = inlined_call_operand.vmem [shape: f32[1,32], index: 2, kind: input, shape index: {}]   ;;  %s273_s4 = inlined_call_operand.vmem [shape: f32[1,32], index: 4, kind: input, shape index: {}]   ;;  %s274_s5 = inlined_call_operand.vmem [shape: f32[1,32], index: 5, kind: input, shape index: {}]   ;;  %s275_s6 = inlined_call_operand.vmem [shape: bf16[16,32], index: 6, kind: output, shape index: {}]  }
   0x1   :  { %183 = vmatprep.subr.bf16.mxu0 %v200_v0  ;;  %v193_v1 = vld [vmem:[%s269_s1] sm:$0xff]   ;;  %187 = vmatprep.mubr.msk.bf16.mxu0 %vm201_vm0, %v200_v0  ;;  %v194_v2 = vld [vmem:[%s269_s1 + $0x8] sm:$0xff]  }
   0x2   :  { %184 = vmatpush3.bf16.msra.mxu0 %v193_v1  ;;  %v195_v3 = vld [vmem:[%s270_s0] sm:$0xff]  }
   0x3   :  { %185 = vmatprep.subr.bf16.mxu0 %v200_v0  ;;  %v177_v4 = vld [vmem:[%s271_s3] sm:$0xff]  }
   0x4   :  { %v165_v5 = vld [vmem:[%s272_s2] ss:$0 sm:$0xff]  ;;  %v178_v6 = vunpack.c.l.bf16 %v177_v4  ;;  %v179_v10 = vunpack.c.h.bf16 %v177_v4 }
   0x5   :  { %v170_v35 = vld [vmem:[%s273_s4] ss:$0 sm:$0xff] }
   0x6   :  { %186 = vmatpush3.bf16.msra.mxu0 %v194_v2  ;;  %v171_v37 = vld [vmem:[%s274_s5] ss:$0 sm:$0xff] }
   0x9   :  { %188 = vmatmul.mubr.msk.bf16.vlgmr.msra.gmra.mrb[0].mxu0 %vm54_vm1, %v195_v3 }
  0xdc   :  { %v92_v7 = vpop.f32.mrb[0].mxu0 }
  0xdd   :  { %v93_v8 = vadd.f32 %v165_v5, %v92_v7  ;;  %v189_v9 = vpop.f32.mrb[1].mxu0 }
  0xde   :  { %v95_v11 = vpop.f32.mrb[2].mxu0 }
  0xdf   :  { %v96_v12 = vadd.f32 %v165_v5, %v95_v11  ;;  %v190_v13 = vpop.f32.mrb[3].mxu0  ;;  %v103_v14 = vadd.f32 %v178_v6, %v93_v8 }
  0xe1   :  { %v105_v15 = vsel %vm54_vm1, %v103_v14, 0.0  ;;  %v104_v16 = vadd.f32 %v179_v10, %v96_v12 }
  0xe2   :  { %106 = vadd.xlane.f32.xlu0 %v105_v15 }
  0xe3   :  { %v108_v17 = vsel %vm54_vm1, %v104_v16, 0.0 }
  0xe6   :  { %109 = vadd.xlane.f32.xlu0 %v108_v17 }
 0x16f   :  { %v107_v18 = vpop.xlane.xlu0 %106 }
 0x170   :  { %v112_v19 = vmul.f32 0.03125, %v107_v18 }
 0x172   :  { %v114_v20 = vsub.f32 %v103_v14, %v112_v19 }
 0x173   :  { %v110_v21 = vpop.xlane.xlu0 %109 }
 0x174   :  { %v113_v22 = vmul.f32 0.03125, %v110_v21  ;;  %v116_v23 = vmul.f32 %v114_v20, %v114_v20 }
 0x176   :  { %v115_v24 = vsub.f32 %v104_v16, %v113_v22  ;;  %v118_v25 = vsel %vm54_vm1, %v116_v23, 0.0 }
 0x177   :  { %119 = vadd.xlane.f32.xlu1 %v118_v25 }
 0x178   :  { %v117_v26 = vmul.f32 %v115_v24, %v115_v24 }
 0x17a   :  { %v121_v27 = vsel %vm54_vm1, %v117_v26, 0.0 }
 0x17b   :  { %122 = vadd.xlane.f32.xlu1 %v121_v27 }
 0x204   :  { %v120_v28 = vpop.xlane.xlu1 %119 }
 0x205   :  { %v124_v29 = vmul.f32 0.03125, %v120_v28 }
 0x207   :  { %v126_v30 = vadd.f32 1e-12, %v124_v29 }
 0x208   :  { %v123_v31 = vpop.xlane.xlu1 %122 }
 0x209   :  { %196 = vrsqrt.f32 %v126_v30  ;;  %v125_v32 = vmul.f32 0.03125, %v123_v31 }
 0x20b   :  { %v127_v33 = vadd.f32 1e-12, %v125_v32 }
 0x20d   :  { %198 = vrsqrt.f32 %v127_v33 }
 0x213   :  { %v197_v34 = vpop.eup %196 }
 0x214   :  { %v130_v36 = vmul.f32 %v197_v34, %v114_v20 }
 0x216   :  { %v139_v38 = vmul.f32 %v170_v35, %v130_v36 }
 0x217   :  { %v199_v39 = vpop.eup %198 }
 0x218   :  { %v148_v40 = vadd.f32 %v171_v37, %v139_v38  ;;  %v131_v41 = vmul.f32 %v199_v39, %v115_v24 }
 0x21a   :  { %v174_v42 = vpack.c.bf16 %v148_v40, %v148_v40  ;;  %v140_v43 = vmul.f32 %v170_v35, %v131_v41 }
 0x21c   :  { %159 = vst.msk [vmem:[%s275_s6] sm:$0xf] %vm158_vm2, %v174_v42  ;;  %v149_v44 = vadd.f32 %v171_v37, %v140_v43 }
 0x21e   :  { %v175_v45 = vpack.c.bf16 %v149_v44, %v149_v44 }
 0x220   :  { %160 = vst.msk [vmem:[%s275_s6 + $0x4] sm:$0xf] %vm158_vm2, %v175_v45 }

// kernel: _lambda_.36
= control target key start
LH: loop header
LB: loop body
LE: loop exit
PB: predicated region body
PF: predicated region fallthrough
CT: control target
= control target key end

     0   :  { %v130_v0 = vmov 0.0   ;;  %vm131_vm0 = vmmov 0   ;;  %vm45_vm1 = vcmask 261120   ;;  %vm98_vm2 = vcmask 257024   ;;  %s170_s1 = inlined_call_operand.vmem [shape: bf16[32,32], index: 1, kind: input, shape index: {}]   ;;  %s171_s0 = inlined_call_operand.vmem [shape: bf16[16,32], index: 0, kind: input, shape index: {}]   ;;  %s172_s2 = inlined_call_operand.vmem [shape: f32[1,32], index: 2, kind: input, shape index: {}]   ;;  %s173_s3 = inlined_call_operand.vmem [shape: bf16[16,32], index: 3, kind: output, shape index: {}]  }
   0x1   :  { %117 = vmatprep.subr.bf16.mxu0 %v130_v0  ;;  %v127_v1 = vld [vmem:[%s170_s1] sm:$0xff]   ;;  %121 = vmatprep.mubr.msk.bf16.mxu0 %vm131_vm0, %v130_v0  ;;  %v128_v2 = vld [vmem:[%s170_s1 + $0x8] sm:$0xff]  }
   0x2   :  { %118 = vmatpush3.bf16.msra.mxu0 %v127_v1  ;;  %v129_v3 = vld [vmem:[%s171_s0] sm:$0xff]  }
   0x3   :  { %119 = vmatprep.subr.bf16.mxu0 %v130_v0  ;;  %v105_v4 = vld [vmem:[%s172_s2] ss:$0 sm:$0xff] }
   0x6   :  { %120 = vmatpush3.bf16.msra.mxu0 %v128_v2 }
   0x9   :  { %122 = vmatmul.mubr.msk.bf16.vlgmr.msra.gmra.mrb[0].mxu0 %vm45_vm1, %v129_v3 }
  0xdc   :  { %v83_v5 = vpop.f32.mrb[0].mxu0 }
  0xdd   :  { %v84_v6 = vadd.f32 %v105_v4, %v83_v5  ;;  %v123_v7 = vpop.f32.mrb[1].mxu0 }
  0xde   :  { %v86_v8 = vpop.f32.mrb[2].mxu0 }
  0xdf   :  { %v112_v9 = vpack.c.bf16 %v84_v6, %v84_v6  ;;  %v87_v10 = vadd.f32 %v105_v4, %v86_v8  ;;  %v124_v11 = vpop.f32.mrb[3].mxu0 }
  0xe1   :  { %99 = vst.msk [vmem:[%s173_s3] sm:$0xf] %vm98_vm2, %v112_v9  ;;  %v113_v12 = vpack.c.bf16 %v87_v10, %v87_v10 }
  0xe3   :  { %100 = vst.msk [vmem:[%s173_s3 + $0x4] sm:$0xf] %vm98_vm2, %v113_v12 }

// kernel: _lambda_.34
= control target key start
LH: loop header
LB: loop body
LE: loop exit
PB: predicated region body
PF: predicated region fallthrough
CT: control target
= control target key end

     0   :  { %s1030_s15 = smov 0   ;;  %s1154_s0 = inlined_call_operand.vmem [shape: bf16[16,32], index: 0, kind: input, shape index: {}]   ;;  %s1155_s1 = inlined_call_operand.vmem [shape: bf16[16,32], index: 1, kind: input, shape index: {}]   ;;  %s1156_s2 = inlined_call_operand.vmem [shape: bf16[16,32], index: 2, kind: input, shape index: {}]   ;;  %s1157_s3 = inlined_call_operand.vmem [shape: f32[2,8,8], index: 3, kind: input, shape index: {}]   ;;  %s1158_s4 = inlined_call_operand.vmem [shape: bf16[16,32], index: 4, kind: output, shape index: {}]  }
   0x1 LB: > { %s849_s16 = sadd.s32 4294967295, %s995_s15   ;;  %p853_p0 = scmp.ge.s32.totalorder %s995_s15, 1  ;;  %s995_s15 = sphi %s1030_s15, %s14_s15  }
   0x2   : > { %p188_p1 = scmp.lt.s32.totalorder %s995_s15, 3 }
   0x4   : > { %p189_p2 = pnand %p853_p0, %p188_p1 }
   0x5   : > { %p224_p3 = scmp.lt.s32.totalorder (!%p189_p2), %s849_s16, 1  ;;  %v997_v0 = vmov (!%p189_p2), 0.0   ;;  %vm998_vm0 = vmmov (!%p189_p2), 0   ;;  %vm249_vm1 = vcmask (!%p189_p2), 64512   ;;  %s999_s28 = smov (!%p189_p2), 120   ;;  %vm314_vm3 = vcmask (!%p189_p2), 1043456  }
   0x6   : > { %192 = sbr.rel (%p189_p2) target bundleno = 1478 (0x5c6), region = 36  ;;  %900 = vmatprep.subr.bf16.mxu0 (!%p189_p2), %v997_v0  ;;  %902 = vmatprep.mubr.msk.bf16.mxu0 (!%p189_p2), %vm998_vm0, %v997_v0  ;;  %s1000_s29 = smov (!%p189_p2), 112   ;;  %vm359_vm4 = vcmask (!%p189_p2), 60416   ;;  %vm492_vm5 = vcmask (!%p189_p2), 126016   ;;  %vm625_vm6 = vcmask (!%p189_p2), 191616   ;;  %vm758_vm7 = vcmask (!%p189_p2), 257216  }
   0x7   : > { %906 = vmatprep.subr.bf16.mxu1 (!%p189_p2), %v997_v0  ;;  %908 = vmatprep.mubr.msk.bf16.mxu1 (!%p189_p2), %vm998_vm0, %v997_v0  ;;  %s1001_s30 = smov (!%p189_p2), 104   ;;  %s1002_s11 = smov (!%p189_p2), 8  }
   0x8   : > { %s1003_s12 = smov (!%p189_p2), 16   ;;  %s1004_s13 = smov (!%p189_p2), 24  }
   0xd   : > { %s1160_s16 = smov (!%p224_p3, %s849_s16), 1 }
   0xe   : > { %s1044_s17 = sshll.u32 %s1160_s16, 2  ;;  %s857_s24 = sshll.u32 %s1160_s16, 3 }
   0xf   : > { %s1050_s20 = scalar_lea.vmem %s1155_s1, %s1044_s17  ;;  %s1057_s23 = scalar_lea.vmem %s1154_s0, %s1044_s17 }
  0x10   : > { %v247_v1 = vld [vmem:[%s1050_s20] sm:$0xf]  ;;  %s239_s27 = scalar_lea.vmem %s1157_s3, %s857_s24  ;;  %s1089_s7 = scalar_lea.vmem %s1156_s2, %s1044_s17 }
  0x11   : > { %v254_v2 = vsel %vm249_vm1, %v247_v1, 0  ;;  %v246_v3 = vld [vmem:[%s1057_s23] sm:$0xf]  ;;  %s1115_s10 = scalar_lea.vmem %s1158_s4, %s1044_s17 }
  0x12   : > { %901 = vmatpush3.bf16.xpose.msra.mxu0 %v254_v2  ;;  %v1068_v4 = vld [vmem:[%s239_s27] sm:$0xff] }
  0x13   : > { %918 = vmatprep.subr.bf16.mxu0 %v997_v0  ;;  %vm297_vm2 = vcmp.gt.f32.partialorder %v1068_v4, 0.0  ;;  %v964_v12 = vld [vmem:[%s1050_s20] ss:$0 sps:$4 sm:$0xff]  }
  0x14   : > { %372 = vrot.lane.b32.xlu1 %v964_v12, %s999_s28  ;;  %v965_v13 = vld [vmem:[%s1057_s23] ss:$0 sps:$4 sm:$0xff]  }
  0x15   : > { %v967_v14 = vld [vmem:[%s1057_s23] ss:$0 sps:$4 sm:$0xff]  }
  0x16   : > { %v968_v15 = vld [vmem:[%s1050_s20] ss:$0 sps:$4 sm:$0xff]  }
  0x17   : > { %v969_v16 = vld [vmem:[%s1057_s23] ss:$0 sps:$4 sm:$0xff]  }
  0x18   : > { %367 = vrot.lane.b32.xlu1 %v965_v13, %s999_s28  ;;  %v248_v22 = vld [vmem:[%s1089_s7] sm:$0xf] }
  0x19   : > { %903 = vmatmul.mubr.msk.bf16.vlgmr.msra.gmra.mrb[0].mxu0 %vm249_vm1, %v246_v3  ;;  %v316_v23 = vsel %vm314_vm3, %v248_v22, 0  ;;  %v966_v24 = vld [vmem:[%s1050_s20] ss:$0 sps:$4 sm:$0xff]  }
  0x1a   : > { %920 = vmatprep.mubr.msk.bf16.mxu0 %vm998_vm0, %v997_v0  ;;  %907 = vmatpush3.bf16.msra.mxu1 %v316_v23  ;;  %v971_v12 = vld [vmem:[%s1089_s7] ss:$0 sps:$4 sm:$0xff]  }
  0x1b   : > { %912 = vmatprep.subr.bf16.mxu1 %v997_v0 }
  0x1c   : > { %500 = vrot.lane.b32.xlu1 %v967_v14, %s1000_s29 }
  0x20   : > { %638 = vrot.lane.b32.xlu1 %v968_v15, %s1001_s30 }
  0x24   : > { %633 = vrot.lane.b32.xlu1 %v969_v16, %s1001_s30 }
  0x86   : > { %v373_v27 = vpop.permute.xlu1 %372 }
  0x87   : > { %v378_v29 = vsel %vm249_vm1, %v373_v27, 0 }
  0x8a   : > { %v368_v31 = vpop.permute.xlu1 %367 }
  0x8e   : > { %v501_v33 = vpop.permute.xlu1 %500 }
  0x92   : > { %v639_v35 = vpop.permute.xlu1 %638 }
  0x93   : > { %v644_v36 = vsel %vm249_vm1, %v639_v35, 0 }
  0x96   : > { %v634_v37 = vpop.permute.xlu1 %633 }
  0xec   : > { %v290_v5 = vpop.f32.mrb[0].mxu0 }
  0xed   : > { %v296_v6 = vmul.f32 0.35355338, %v290_v5  ;;  %v904_v7 = vpop.f32.mrb[1].mxu0 }
  0xee   : > { %v293_v8 = vpop.f32.mrb[2].mxu0 }
  0xef   : > { %v905_v9 = vpop.f32.mrb[3].mxu0  ;;  %v298_v10 = vsel %vm297_vm2, %v296_v6, -10000.0 }
  0xf0   : > { %v299_v11 = vsel %vm249_vm1, %v298_v10, -inf }
  0xf1   : > { %300 = vmax.xlane.f32.xlu0 %v299_v11  ;;  %v970_v11 = vld [vmem:[%s1089_s7] ss:$0 sps:$4 sm:$0xff]  }
 0x17e   : > { %v301_v17 = vpop.xlane.xlu0 %300 }
 0x17f   : > { %v302_v18 = vsub.f32 %v298_v10, %v301_v17 }
 0x181   : > { %v303_v19 = vmul.f32 1.442695, %v302_v18  ;;  %v972_v18 = vld [vmem:[%s1089_s7] ss:$0 sps:$4 sm:$0xff]  }
 0x183   : > { %973 = vpow2.f32 %v303_v19 }
 0x18d   : > { %v974_v20 = vpop.eup %973 }
 0x18e   : > { %v305_v21 = vsel %vm249_vm1, %v974_v20, 0.0 }
 0x18f   : > { %306 = vadd.xlane.f32.xlu0 %v305_v21 }
 0x1a5   : > { %505 = vrot.lane.b32.xlu0 %v966_v24, %s1000_s29 }
 0x21c   : > { %v307_v25 = vpop.xlane.xlu0 %306 }
 0x21d   : > { %975 = vrcp.f32 %v307_v25 }
 0x220   : > { %v506_v32 = vpop.permute.xlu0 %505 }
 0x221   : > { %v511_v34 = vsel %vm249_vm1, %v506_v32, 0 }
 0x227   : > { %v976_v26 = vpop.eup %975 }
 0x228   : > { %v309_v28 = vmul.f32 %v976_v26, %v974_v20 }
 0x22a   : > { %v310_v30 = vpack.c.bf16 %v309_v28, %v309_v28 }
 0x22c   : > { %909 = vmatmul.mubr.msk.bf16.vlgmr.msra.gmra.mrb[0].mxu1 %vm249_vm1, %v310_v30 }
 0x22d   : > { %913 = vmatpush3.bf16.xpose.msra.mxu1 %v378_v29  ;;  %914 = vmatprep.mubr.msk.bf16.mxu1 %vm998_vm0, %v997_v0 }
 0x22e   : > { %924 = vmatprep.subr.bf16.mxu1 %v997_v0 }
 0x234   : > { %915 = vmatmul.mubr.msk.bf16.vlgmr.msra.gmra.mrb[4].mxu1 %vm249_vm1, %v368_v31 }
 0x235   : > { %925 = vmatpush3.bf16.xpose.msra.mxu1 %v511_v34  ;;  %926 = vmatprep.mubr.msk.bf16.mxu1 %vm998_vm0, %v997_v0 }
 0x236   : > { %936 = vmatprep.subr.bf16.mxu1 %v997_v0 }
 0x23c   : > { %927 = vmatmul.mubr.msk.bf16.vlgmr.msra.gmra.mrb[8].mxu1 %vm249_vm1, %v501_v33 }
 0x23d   : > { %937 = vmatpush3.bf16.xpose.msra.mxu1 %v644_v36  ;;  %938 = vmatprep.mubr.msk.bf16.mxu1 %vm998_vm0, %v997_v0 }
 0x244   : > { %939 = vmatmul.mubr.msk.bf16.vlgmr.msra.gmra.mrb[12].mxu1 %vm249_vm1, %v634_v37 }
 0x2ff   : > { %v352_v38 = vpop.f32.mrb[0].mxu1 }
 0x300   : > { %v358_v39 = vpack.c.bf16 %v352_v38, %v352_v38  ;;  %v910_v40 = vpop.f32.mrb[1].mxu1 }
 0x301   : > { %v355_v41 = vpop.f32.mrb[2].mxu1 }
 0x302   : > { %360 = vst.msk [vmem:[%s1115_s10] sm:$0xf] %vm359_vm4, %v358_v39  ;;  %v911_v42 = vpop.f32.mrb[3].mxu1 }
 0x307   : > { %v414_v43 = vpop.f32.mrb[4].mxu1 }
 0x308   : > { %v420_v44 = vmul.f32 0.35355338, %v414_v43  ;;  %v916_v45 = vpop.f32.mrb[5].mxu1 }
 0x309   : > { %v417_v46 = vpop.f32.mrb[6].mxu1 }
 0x30a   : > { %v917_v47 = vpop.f32.mrb[7].mxu1  ;;  %v421_v48 = vsel %vm297_vm2, %v420_v44, -10000.0 }
 0x30b   : > { %v422_v49 = vsel %vm249_vm1, %v421_v48, -inf }
 0x30c   : > { %423 = vmax.xlane.f32.xlu1 %v422_v49 }
 0x30f   : > { %v547_v50 = vpop.f32.mrb[8].mxu1 }
 0x310   : > { %v553_v51 = vmul.f32 0.35355338, %v547_v50  ;;  %v928_v52 = vpop.f32.mrb[9].mxu1 }
 0x311   : > { %v550_v53 = vpop.f32.mrb[10].mxu1 }
 0x312   : > { %v554_v54 = vsel %vm297_vm2, %v553_v51, -10000.0  ;;  %v929_v55 = vpop.f32.mrb[11].mxu1 }
 0x313   : > { %v555_v56 = vsel %vm249_vm1, %v554_v54, -inf }
 0x314   : > { %556 = vmax.xlane.f32.xlu0 %v555_v56 }
 0x317   : > { %v680_v57 = vpop.f32.mrb[12].mxu1 }
 0x318   : > { %v686_v58 = vmul.f32 0.35355338, %v680_v57  ;;  %v940_v59 = vpop.f32.mrb[13].mxu1 }
 0x319   : > { %v683_v60 = vpop.f32.mrb[14].mxu1 }
 0x31a   : > { %v687_v61 = vsel %vm297_vm2, %v686_v58, -10000.0  ;;  %v941_v62 = vpop.f32.mrb[15].mxu1 }
 0x31b   : > { %v688_v63 = vsel %vm249_vm1, %v687_v61, -inf }
 0x31c   : > { %689 = vmax.xlane.f32.xlu1 %v688_v63 }
 0x399   : > { %v424_v1 = vpop.xlane.xlu1 %423 }
 0x39a   : > { %v425_v2 = vsub.f32 %v421_v48, %v424_v1 }
 0x39c   : > { %v426_v3 = vmul.f32 1.442695, %v425_v2 }
 0x39e   : > { %977 = vpow2.f32 %v426_v3 }
 0x3a1   : > { %v557_v5 = vpop.xlane.xlu0 %556 }
 0x3a2   : > { %v558_v6 = vsub.f32 %v554_v54, %v557_v5 }
 0x3a4   : > { %v559_v7 = vmul.f32 1.442695, %v558_v6 }
 0x3a6   : > { %979 = vpow2.f32 %v559_v7 }
 0x3a8   : > { %v978_v8 = vpop.eup %977 }
 0x3a9   : > { %v428_v9 = vsel %vm249_vm1, %v978_v8, 0.0  ;;  %v690_v13 = vpop.xlane.xlu1 %689 }
 0x3aa   : > { %429 = vadd.xlane.f32.xlu1 %v428_v9  ;;  %v691_v14 = vsub.f32 %v687_v61, %v690_v13 }
 0x3ac   : > { %v692_v15 = vmul.f32 1.442695, %v691_v14 }
 0x3ae   : > { %981 = vpow2.f32 %v692_v15 }
 0x3b0   : > { %v980_v4 = vpop.eup %979 }
 0x3b1   : > { %v561_v10 = vsel %vm249_vm1, %v980_v4, 0.0 }
 0x3b2   : > { %562 = vadd.xlane.f32.xlu0 %v561_v10 }
 0x3b8   : > { %v982_v16 = vpop.eup %981 }
 0x3b9   : > { %v694_v17 = vsel %vm249_vm1, %v982_v16, 0.0 }
 0x3bb   : > { %570 = vrot.lane.b32.xlu1 %v970_v11, %s1000_s29 }
 0x3c8   : > { %437 = vrot.lane.b32.xlu0 %v971_v12, %s999_s28 }
 0x3df   : > { %695 = vadd.xlane.f32.xlu1 %v694_v17 }
 0x3f0   : > { %703 = vrot.lane.b32.xlu1 %v972_v18, %s1001_s30 }
 0x437   : > { %v430_v19 = vpop.xlane.xlu1 %429 }
 0x438   : > { %983 = vrcp.f32 %v430_v19 }
 0x43b   : > { %v571_v25 = vpop.permute.xlu1 %570 }
 0x43c   : > { %v576_v27 = vsel %vm314_vm3, %v571_v25, 0 }
 0x43f   : > { %v563_v20 = vpop.xlane.xlu0 %562 }
 0x440   : > { %985 = vrcp.f32 %v563_v20 }
 0x442   : > { %v984_v21 = vpop.eup %983 }
 0x443   : > { %v432_v22 = vmul.f32 %v984_v21, %v978_v8  ;;  %v438_v23 = vpop.permute.xlu0 %437 }
 0x444   : > { %v443_v24 = vsel %vm314_vm3, %v438_v23, 0 }
 0x445   : > { %919 = vmatpush3.bf16.msra.mxu0 %v443_v24  ;;  %v433_v26 = vpack.c.bf16 %v432_v22, %v432_v22 }
 0x446   : > { %930 = vmatprep.subr.bf16.mxu0 %v997_v0 }
 0x448   : > { %921 = vmatmul.mubr.msk.bf16.vlgmr.msra.gmra.mrb[4].mxu0 %vm249_vm1, %v433_v26 }
 0x449   : > { %931 = vmatpush3.bf16.msra.mxu0 %v576_v27  ;;  %932 = vmatprep.mubr.msk.bf16.mxu0 %vm998_vm0, %v997_v0 }
 0x44a   : > { %v986_v28 = vpop.eup %985  ;;  %942 = vmatprep.subr.bf16.mxu0 %v997_v0 }
 0x44b   : > { %v565_v29 = vmul.f32 %v986_v28, %v980_v4 }
 0x44d   : > { %v566_v30 = vpack.c.bf16 %v565_v29, %v565_v29 }
 0x450   : > { %933 = vmatmul.mubr.msk.bf16.vlgmr.msra.gmra.mrb[8].mxu0 %vm249_vm1, %v566_v30 }
 0x451   : > { %944 = vmatprep.mubr.msk.bf16.mxu0 %vm998_vm0, %v997_v0 }
 0x46c   : > { %v696_v31 = vpop.xlane.xlu1 %695 }
 0x46d   : > { %987 = vrcp.f32 %v696_v31 }
 0x470   : > { %v704_v32 = vpop.permute.xlu1 %703 }
 0x471   : > { %v709_v33 = vsel %vm314_vm3, %v704_v32, 0 }
 0x472   : > { %943 = vmatpush3.bf16.msra.mxu0 %v709_v33 }
 0x477   : > { %v988_v34 = vpop.eup %987 }
 0x478   : > { %v698_v35 = vmul.f32 %v988_v34, %v982_v16 }
 0x47a   : > { %v699_v36 = vpack.c.bf16 %v698_v35, %v698_v35 }
 0x47c   : > { %945 = vmatmul.mubr.msk.bf16.vlgmr.msra.gmra.mrb[12].mxu0 %vm249_vm1, %v699_v36 }
 0x51b   : > { %v479_v37 = vpop.f32.mrb[4].mxu0 }
 0x51c   : > { %v881_v38 = vpack.c.bf16 %v479_v37, %v479_v37  ;;  %v922_v39 = vpop.f32.mrb[5].mxu0 }
 0x51d   : > { %v482_v40 = vpop.f32.mrb[6].mxu0 }
 0x51e   : > { %489 = vrot.lane.b32.xlu0 %v881_v38, %s1002_s11  ;;  %v923_v41 = vpop.f32.mrb[7].mxu0 }
 0x523   : > { %v612_v42 = vpop.f32.mrb[8].mxu0 }
 0x524   : > { %v882_v0 = vpack.c.bf16 %v612_v42, %v612_v42  ;;  %v934_v43 = vpop.f32.mrb[9].mxu0 }
 0x525   : > { %v615_v44 = vpop.f32.mrb[10].mxu0 }
 0x526   : > { %622 = vrot.lane.b32.xlu1 %v882_v0, %s1003_s12  ;;  %v935_v45 = vpop.f32.mrb[11].mxu0 }
 0x54f   : > { %v745_v46 = vpop.f32.mrb[12].mxu0 }
 0x550   : > { %v883_v47 = vpack.c.bf16 %v745_v46, %v745_v46  ;;  %v946_v48 = vpop.f32.mrb[13].mxu0 }
 0x551   : > { %v748_v49 = vpop.f32.mrb[14].mxu0 }
 0x552   : > { %755 = vrot.lane.b32.xlu0 %v883_v47, %s1004_s13  ;;  %v947_v50 = vpop.f32.mrb[15].mxu0 }
 0x590   : > { %v490_v51 = vpop.permute.xlu0 %489 }
 0x591   : > { %493 = vst.msk [vmem:[%s1115_s10] sm:$0xf] %vm492_vm5, %v490_v51 }
 0x598   : > { %v623_v52 = vpop.permute.xlu1 %622 }
 0x599   : > { %626 = vst.msk [vmem:[%s1115_s10] sm:$0xf] %vm625_vm6, %v623_v52 }
 0x5c4   : > { %v756_v53 = vpop.permute.xlu0 %755 }
 0x5c5   : > { %759 = vst.msk [vmem:[%s1115_s10] sm:$0xf] %vm758_vm7, %v756_v53 }
 0x5c6 PF: > { %s14_s15 = sadd.s32 1, %s995_s15  }
 0x5c7   : > { %p11_p4 = scmp.ge.s32.totalorder %s14_s15, 4  }
 0x5c9   :  { %13 = sbr.rel (!%p11_p4) target bundleno = 1 (0x1), region = 75 }

// kernel: _lambda_.49
= control target key start
LH: loop header
LB: loop body
LE: loop exit
PB: predicated region body
PF: predicated region fallthrough
CT: control target
= control target key end

     0   :  { %v157_v1 = vmov 0.0   ;;  %vm158_vm0 = vmmov 0   ;;  %s206_s0 = inlined_call_operand.vmem [shape: bf16[16,32], index: 0, kind: input, shape index: {}]   ;;  %s207_s1 = inlined_call_operand.vmem [shape: bf16[32,32], index: 1, kind: input, shape index: {}]   ;;  %s208_s2 = inlined_call_operand.vmem [shape: f32[1,32], index: 2, kind: input, shape index: {}]   ;;  %s209_s3 = inlined_call_operand.hbm [shape: f32[16,32], index: 3, kind: output, shape index: {}]  }
   0x1   :  { %v130_v0 = vld [vmem:[%s207_s1] sm:$0xff]   ;;  %117 = vmatprep.subr.bf16.mxu0 %v157_v1  ;;  %v131_v2 = vld [vmem:[%s207_s1 + $0x8] sm:$0xff]   ;;  %121 = vmatprep.mubr.msk.bf16.mxu0 %vm158_vm0, %v157_v1 }
   0x2   :  { %118 = vmatpush3.bf16.msra.mxu0 %v130_v0 }
   0x3   :  { %119 = vmatprep.subr.bf16.mxu0 %v157_v1 }
   0x4   :  { %8 = vsyncpa [#allocation3], 0  ;;  %v132_v3 = vld [vmem:[%s206_s0] sm:$0xff]   ;;  %vm46_vm1 = vcmask 261120   ;;  %s159_s20 = smov [#allocation2]  }
   0x5   :  { %v109_v4 = vld [vmem:[%s208_s2] ss:$0 sm:$0xff]  ;;  %s98_s21 = sshll.u32 %s159_s20, 4  ;;  %s99_s21 = int_to_ptr.vmem [resolvable:$true] %s98_s21 }
   0x6   :  { %120 = vmatpush3.bf16.msra.mxu0 %v131_v2  ;;  %s133_s1 = scalar_lea.vmem %s99_s21, 256  ;;  %p138_p1 = scmp.lt.s32.totalorder %s99_s21, %s99_s21 }
   0x7   :  { %p134_p0 = scmp.ne.s32.totalorder %s99_s21, %s133_s1  ;;  %p139_p2 = scmp.lt.s32.totalorder %s133_s1, %s133_s1 }
   0x9   :  { %122 = vmatmul.mubr.msk.bf16.vlgmr.msra.gmra.mrb[0].mxu0 %vm46_vm1, %v132_v3  ;;  %p140_p3 = por %p139_p2, %p138_p1 }
   0xb   :  { %p141_p4 = pnand %p140_p3, %p134_p0 }
  0xdc   :  { %v84_v5 = vpop.f32.mrb[0].mxu0 }
  0xdd   :  { %v85_v6 = vadd.f32 %v109_v4, %v84_v5  ;;  %v123_v7 = vpop.f32.mrb[1].mxu0 }
  0xde   :  { %v87_v8 = vpop.f32.mrb[2].mxu0 }
  0xdf   :  { %91 = vst.msk [vmem:[#allocation2] sm:$0xff] %vm46_vm1, %v85_v6  ;;  %v88_v9 = vadd.f32 %v109_v4, %v87_v8  ;;  %v124_v10 = vpop.f32.mrb[3].mxu0 }
  0xe1   :  { %92 = vst.msk [vmem:[#allocation2 + $0x8] sm:$0xff] %vm46_vm1, %v88_v9 }
  0xe2   :  { %144 = shalt.err (!%p141_p4)
}
  0xe3   :  { %s145_s22 = scalar_lea.hbm %s209_s3, 256 }
  0xe4   :  { %p146_p5 = scmp.ne.s32.totalorder %s209_s3, %s145_s22  ;;  %p149_p6 = scmp.lt.u32.totalorder %s145_s22, %s209_s3 }
  0xe6   :  { %p151_p7 = pnand %p149_p6, %p146_p5 }
  0xe8   :  { %154 = shalt.err (!%p151_p7)
}
  0xe9   :  { %s160_s27 = smov 128   ;;  %s161_s28 = smov 8  }
  0xea   :  { %104 = dma.vmem_to_hbm [thread:$0]  %s99_s21, 256, %s209_s3, [#allocation3], %s160_s27, %s160_s27, %s161_s28  }
  0xeb   :  { %155 = dma.done.wait [#allocation3], 256  }
  0xec   :  { %156 = vsyncadd [#allocation3], 4294967040 }
  0xed   :  { %108 = vsyncpa [#allocation3], 1 }

// kernel: _lambda_.37
= control target key start
LH: loop header
LB: loop body
LE: loop exit
PB: predicated region body
PF: predicated region fallthrough
CT: control target
= control target key end

     0   :  { %v237_v0 = vmov 0.0   ;;  %vm238_vm0 = vmmov 0   ;;  %vm53_vm1 = vcmask 261120   ;;  %vm170_vm2 = vcmask 257024   ;;  %s311_s1 = inlined_call_operand.vmem [shape: bf16[32,32], index: 1, kind: input, shape index: {}]   ;;  %s312_s3 = inlined_call_operand.vmem [shape: bf16[32,32], index: 3, kind: input, shape index: {}]   ;;  %s313_s0 = inlined_call_operand.vmem [shape: bf16[16,32], index: 0, kind: input, shape index: {}]   ;;  %s314_s2 = inlined_call_operand.vmem [shape: f32[1,32], index: 2, kind: input, shape index: {}]   ;;  %s315_s4 = inlined_call_operand.vmem [shape: f32[1,32], index: 4, kind: input, shape index: {}]   ;;  %s316_s5 = inlined_call_operand.vmem [shape: bf16[16,32], index: 5, kind: output, shape index: {0}]   ;;  %s317_s6 = inlined_call_operand.vmem [shape: bf16[16,32], index: 6, kind: output, shape index: {1}]  }
   0x1   :  { %214 = vmatprep.subr.bf16.mxu0 %v237_v0  ;;  %222 = vmatprep.subr.bf16.mxu1 %v237_v0  ;;  %v232_v1 = vld [vmem:[%s311_s1] sm:$0xff]   ;;  %v234_v3 = vld [vmem:[%s311_s1 + $0x8] sm:$0xff]  }
   0x2   :  { %v233_v2 = vld [vmem:[%s312_s3] sm:$0xff]   ;;  %218 = vmatprep.mubr.msk.bf16.mxu0 %vm238_vm0, %v237_v0  ;;  %226 = vmatprep.mubr.msk.bf16.mxu1 %vm238_vm0, %v237_v0  ;;  %v235_v4 = vld [vmem:[%s312_s3 + $0x8] sm:$0xff]  }
   0x3   :  { %215 = vmatpush3.bf16.msra.mxu0 %v232_v1  ;;  %223 = vmatpush3.bf16.msra.mxu1 %v233_v2  ;;  %v236_v5 = vld [vmem:[%s313_s0] sm:$0xff]  }
   0x4   :  { %216 = vmatprep.subr.bf16.mxu0 %v237_v0  ;;  %224 = vmatprep.subr.bf16.mxu1 %v237_v0  ;;  %v191_v6 = vld [vmem:[%s314_s2] ss:$0 sm:$0xff] }
   0x5   :  { %v196_v7 = vld [vmem:[%s315_s4] ss:$0 sm:$0xff] }
   0x7   :  { %217 = vmatpush3.bf16.msra.mxu0 %v234_v3  ;;  %225 = vmatpush3.bf16.msra.mxu1 %v235_v4 }
   0xa   :  { %219 = vmatmul.mubr.msk.bf16.vlgmr.msra.gmra.mrb[0].mxu0 %vm53_vm1, %v236_v5  ;;  %227 = vmatmul.mubr.msk.bf16.vlgmr.msra.gmra.mrb[0].mxu1 %vm53_vm1, %v236_v5 }
  0xdd   :  { %v91_v8 = vpop.f32.mrb[0].mxu0  ;;  %v155_v10 = vpop.f32.mrb[0].mxu1 }
  0xde   :  { %v92_v9 = vadd.f32 %v191_v6, %v91_v8  ;;  %v220_v11 = vpop.f32.mrb[1].mxu0  ;;  %v156_v12 = vadd.f32 %v196_v7, %v155_v10  ;;  %v228_v13 = vpop.f32.mrb[1].mxu1 }
  0xdf   :  { %v94_v14 = vpop.f32.mrb[2].mxu0  ;;  %v158_v17 = vpop.f32.mrb[2].mxu1 }
  0xe0   :  { %v204_v15 = vpack.c.bf16 %v92_v9, %v92_v9  ;;  %v95_v16 = vadd.f32 %v191_v6, %v94_v14  ;;  %v221_v18 = vpop.f32.mrb[3].mxu0  ;;  %v206_v19 = vpack.c.bf16 %v156_v12, %v156_v12  ;;  %v159_v20 = vadd.f32 %v196_v7, %v158_v17  ;;  %v229_v21 = vpop.f32.mrb[3].mxu1 }
  0xe2   :  { %171 = vst.msk [vmem:[%s316_s5] sm:$0xf] %vm170_vm2, %v204_v15  ;;  %v205_v22 = vpack.c.bf16 %v95_v16, %v95_v16  ;;  %181 = vst.msk [vmem:[%s317_s6] sm:$0xf] %vm170_vm2, %v206_v19  ;;  %v207_v23 = vpack.c.bf16 %v159_v20, %v159_v20 }
  0xe4   :  { %172 = vst.msk [vmem:[%s316_s5 + $0x4] sm:$0xf] %vm170_vm2, %v205_v22  ;;  %182 = vst.msk [vmem:[%s317_s6 + $0x4] sm:$0xf] %vm170_vm2, %v207_v23 }

// kernel: _lambda_.28
= control target key start
LH: loop header
LB: loop body
LE: loop exit
PB: predicated region body
PF: predicated region fallthrough
CT: control target
= control target key end

     0   :  { %v312_v0 = vmov 0.0   ;;  %vm313_vm0 = vmmov 0   ;;  %vm57_vm1 = vcmask 261120   ;;  %vm144_vm2 = vcmask 523264   ;;  %s398_s1 = inlined_call_operand.vmem [shape: bf16[32,64], index: 1, kind: input, shape index: {}]   ;;  %s399_s0 = inlined_call_operand.vmem [shape: bf16[16,32], index: 0, kind: input, shape index: {}]   ;;  %s400_s3 = inlined_call_operand.vmem [shape: bf16[64,32], index: 3, kind: input, shape index: {}]   ;;  %s401_s2 = inlined_call_operand.vmem [shape: f32[1,64], index: 2, kind: input, shape index: {}]   ;;  %s402_s4 = inlined_call_operand.vmem [shape: f32[1,32], index: 4, kind: input, shape index: {}]   ;;  %s403_s5 = inlined_call_operand.vmem [shape: f32[1,32], index: 5, kind: input, shape index: {}]   ;;  %s404_s6 = inlined_call_operand.vmem [shape: f32[1,32], index: 6, kind: input, shape index: {}]   ;;  %s405_s7 = inlined_call_operand.vmem [shape: bf16[16,32], index: 7, kind: output, shape index: {}]  }
   0x1   :  { %278 = vmatprep.subr.bf16.mxu0 %v312_v0  ;;  %v300_v1 = vld [vmem:[%s398_s1] sm:$0xff]   ;;  %282 = vmatprep.mubr.msk.bf16.mxu0 %vm313_vm0, %v312_v0  ;;  %v301_v2 = vld [vmem:[%s398_s1 + $0x8] sm:$0xff]   ;;  %v305_v6 = vld [vmem:[%s400_s3 + $0x10] sm:$0xff]   ;;  %vm246_vm3 = vcmask 257024  }
   0x2   :  { %286 = vmatprep.subr.bf16.mxu1 %v312_v0  ;;  %294 = vmatprep.mubr.msk.bf16.mxu1 %vm313_vm0, %v312_v0  ;;  %v27_v3 = vld [vmem:[%s399_s0] sm:$0xff]   ;;  %v304_v5 = vld [vmem:[%s400_s3 + $0x8] sm:$0xff]   ;;  %v306_v7 = vld [vmem:[%s400_s3 + $0x18] sm:$0xff]  }
   0x3   :  { %279 = vmatpush3.bf16.msra.mxu0 %v300_v1  ;;  %v303_v4 = vld [vmem:[%s400_s3] sm:$0xff]   ;;  %v189_v19 = vunpack.c.l.bf16 %v27_v3  ;;  %v190_v23 = vunpack.c.h.bf16 %v27_v3 }
   0x4   :  { %280 = vmatprep.subr.bf16.mxu0 %v312_v0  ;;  %287 = vmatpush3.bf16.msra.mxu1 %v303_v4  ;;  %v253_v8 = vld [vmem:[%s401_s2] ss:$0 sm:$0xff] }
   0x5   :  { %288 = vmatprep.subr.bf16.mxu1 %v312_v0  ;;  %v258_v18 = vld [vmem:[%s402_s4] ss:$0 sm:$0xff] }
   0x6   :  { %v264_v48 = vld [vmem:[%s403_s5] ss:$0 sm:$0xff] }
   0x7   :  { %281 = vmatpush3.bf16.msra.mxu0 %v301_v2  ;;  %v265_v50 = vld [vmem:[%s404_s6] ss:$0 sm:$0xff] }
   0x8   :  { %289 = vmatpush3.bf16.msra.mxu1 %v304_v5 }
   0x9   :  { %290 = vmatprep.subr.bf16.mxu1 %v312_v0 }
   0xa   :  { %283 = vmatmul.mubr.msk.bf16.vlgmr.msra.gmra.mrb[0].mxu0 %vm57_vm1, %v27_v3 }
   0xc   :  { %291 = vmatpush3.bf16.msra.mxu1 %v305_v6 }
   0xd   :  { %292 = vmatprep.subr.bf16.mxu1 %v312_v0 }
  0x10   :  { %293 = vmatpush3.bf16.msra.mxu1 %v306_v7 }
  0xdd   :  { %v95_v9 = vpop.f32.mrb[0].mxu0 }
  0xde   :  { %v96_v10 = vadd.f32 %v253_v8, %v95_v9  ;;  %v284_v11 = vpop.f32.mrb[1].mxu0 }
  0xdf   :  { %v98_v12 = vpop.f32.mrb[2].mxu0 }
  0xe0   :  { %v99_v13 = vadd.f32 %v253_v8, %v98_v12  ;;  %v285_v14 = vpop.f32.mrb[3].mxu0  ;;  %v102_v15 = vmax.f32 %v96_v10, 0.0 }
  0xe2   :  { %v103_v16 = vmax.f32 %v99_v13, 0.0 }
  0xe4   :  { %v104_v17 = vpack.c.bf16 %v103_v16, %v102_v15 }
  0xe6   :  { %295 = vmatmul.mubr.msk.bf16.vlgmr.msra.gmra.mrb[0].mxu1 %vm144_vm2, %v104_v17 }
 0x1b9   :  { %v182_v20 = vpop.f32.mrb[0].mxu1 }
 0x1ba   :  { %v183_v21 = vadd.f32 %v258_v18, %v182_v20  ;;  %v296_v22 = vpop.f32.mrb[1].mxu1 }
 0x1bb   :  { %v185_v24 = vpop.f32.mrb[2].mxu1 }
 0x1bc   :  { %v186_v25 = vadd.f32 %v258_v18, %v185_v24  ;;  %v297_v26 = vpop.f32.mrb[3].mxu1  ;;  %v191_v27 = vadd.f32 %v189_v19, %v183_v21 }
 0x1be   :  { %v193_v28 = vsel %vm57_vm1, %v191_v27, 0.0  ;;  %v192_v29 = vadd.f32 %v190_v23, %v186_v25 }
 0x1bf   :  { %194 = vadd.xlane.f32.xlu0 %v193_v28 }
 0x1c0   :  { %v196_v30 = vsel %vm57_vm1, %v192_v29, 0.0 }
 0x1c3   :  { %197 = vadd.xlane.f32.xlu0 %v196_v30 }
 0x24c   :  { %v195_v31 = vpop.xlane.xlu0 %194 }
 0x24d   :  { %v200_v32 = vmul.f32 0.03125, %v195_v31 }
 0x24f   :  { %v202_v33 = vsub.f32 %v191_v27, %v200_v32 }
 0x250   :  { %v198_v34 = vpop.xlane.xlu0 %197 }
 0x251   :  { %v201_v35 = vmul.f32 0.03125, %v198_v34  ;;  %v204_v36 = vmul.f32 %v202_v33, %v202_v33 }
 0x253   :  { %v203_v37 = vsub.f32 %v192_v29, %v201_v35  ;;  %v206_v38 = vsel %vm57_vm1, %v204_v36, 0.0 }
 0x254   :  { %207 = vadd.xlane.f32.xlu1 %v206_v38 }
 0x255   :  { %v205_v39 = vmul.f32 %v203_v37, %v203_v37 }
 0x257   :  { %v209_v40 = vsel %vm57_vm1, %v205_v39, 0.0 }
 0x258   :  { %210 = vadd.xlane.f32.xlu1 %v209_v40 }
 0x2e1   :  { %v208_v41 = vpop.xlane.xlu1 %207 }
 0x2e2   :  { %v212_v42 = vmul.f32 0.03125, %v208_v41 }
 0x2e4   :  { %v214_v43 = vadd.f32 1e-12, %v212_v42 }
 0x2e5   :  { %v211_v44 = vpop.xlane.xlu1 %210 }
 0x2e6   :  { %308 = vrsqrt.f32 %v214_v43  ;;  %v213_v45 = vmul.f32 0.03125, %v211_v44 }
 0x2e8   :  { %v215_v46 = vadd.f32 1e-12, %v213_v45 }
 0x2ea   :  { %310 = vrsqrt.f32 %v215_v46 }
 0x2f0   :  { %v309_v47 = vpop.eup %308 }
 0x2f1   :  { %v218_v49 = vmul.f32 %v309_v47, %v202_v33 }
 0x2f3   :  { %v227_v51 = vmul.f32 %v264_v48, %v218_v49 }
 0x2f4   :  { %v311_v52 = vpop.eup %310 }
 0x2f5   :  { %v236_v53 = vadd.f32 %v265_v50, %v227_v51  ;;  %v219_v54 = vmul.f32 %v311_v52, %v203_v37 }
 0x2f7   :  { %v268_v55 = vpack.c.bf16 %v236_v53, %v236_v53  ;;  %v228_v56 = vmul.f32 %v264_v48, %v219_v54 }
 0x2f9   :  { %247 = vst.msk [vmem:[%s405_s7] sm:$0xf] %vm246_vm3, %v268_v55  ;;  %v237_v57 = vadd.f32 %v265_v50, %v228_v56 }
 0x2fb   :  { %v269_v58 = vpack.c.bf16 %v237_v57, %v237_v57 }
 0x2fd   :  { %248 = vst.msk [vmem:[%s405_s7 + $0x4] sm:$0xf] %vm246_vm3, %v269_v58 }

</bundles_post_ra>
